<compile_context>
chip_gen: v7x
topology: tpu7x:2x2x1
jax: 0.10.0
libtpu: 0.0.40
codegen_flags: <defaults>
</compile_context>

<pallas_src>
import functools
import math

import jax
import jax.numpy as jnp
from jax.experimental import pallas as pl
from jax.experimental.pallas import tpu as pltpu


# ---------------------------------------------------------------------------
# VMEM sizing helpers
# ---------------------------------------------------------------------------

def _vmem_capacity_bytes():
    try:
        info = pltpu.get_tpu_info()
        cap = getattr(info, "vmem_capacity_bytes", None)
        if cap:
            return int(cap)
    except Exception:
        pass
    return 64 * 1024 * 1024  # conservative default: v7x per-TensorCore VMEM


def _vmem_limits():
    """(scoped vmem limit, block budget) derived from the chip's VMEM size."""
    cap = _vmem_capacity_bytes()
    # 128 MiB parts (v5e/v6e) -> 96 MiB limit / 64 MiB budget;
    # 64 MiB parts (v7x)      -> 48 MiB limit / 32 MiB budget.
    limit = min(cap * 3 // 4, 100 * 1024 * 1024)
    budget = limit * 2 // 3
    return limit, budget


def _flat_geometry(height, width, kh, kw):
    """Flat-spatial sizes for the zero-padded pooled scratch."""
    spatial = height * width
    ph, pw = kh // 2, kw // 2
    # Left pad: >= ph*W + pw, rounded up to 128 so the pooled-data store is
    # lane-aligned.  Right pad: ph*W + pw plus a small guard so every tap's
    # strip slice stays in bounds (out-of-row taps are masked, so the values
    # read there never matter, they only have to be addressable).
    padl = ((ph * width + pw + 127) // 128) * 128
    padr = ph * width + pw + 8
    return spatial, padl, padl + spatial + padr


def _pick_c_tile(c, spatial, itemsize, resident_bytes, budget):
    """Largest channel tile (multiple of 8 dividing C, or C itself) whose
    double-buffered x-in + out blocks plus resident state fit the budget."""
    cands = sorted({tc for tc in range(8, c + 1, 8) if c % tc == 0} | {c})
    best = cands[0]
    for tc in cands:
        if 4 * tc * spatial * itemsize + resident_bytes <= budget:
            best = tc
    return best


# ---------------------------------------------------------------------------
# Shared in-kernel conv helper (flat spatial domain)
# ---------------------------------------------------------------------------

def _conv_sigmoid_flat(w_ref, p_ref, *, spatial, width, padl, kh, kw):
    """kh x kw cross-correlation (2 channels -> 1, no bias) + sigmoid, computed
    directly on the flattened spatial axis.

    w_ref : (2*kh*kw,) f32 in SMEM (scalar taps, PyTorch OIHW order).
    p_ref : (2, L) f32 VMEM scratch; the flattened pooled map lives at
            [:, padl : padl + spatial], every other element is zero (this is
            the conv's zero padding along H).  Zero padding along W is handled
            by masking taps whose column offset leaves the row.
    Returns the attention map as a (1, spatial) f32 array.
    """
    ph, pw = kh // 2, kw // 2
    col = jax.lax.broadcasted_iota(jnp.int32, (1, spatial), 1) % width  # hoisted
    acc = None
    for dj in range(kw):
        sub = None
        for c in range(2):
            for di in range(kh):
                off = padl + (di - ph) * width + (dj - pw)        # static offset
                tap = w_ref[c * kh * kw + di * kw + dj]           # SMEM scalar
                term = tap * p_ref[c:c + 1, off:off + spatial]    # (1, spatial)
                sub = term if sub is None else sub + term
        if dj != pw:
            # Taps whose column offset (dj - pw) walks off the row would wrap
            # to the neighbouring row in flat space -> mask them to zero.
            valid = (col >= pw - dj) & (col < width + pw - dj)
            sub = jnp.where(valid, sub, 0.0)
        acc = sub if acc is None else acc + sub
    return jax.nn.sigmoid(acc)                                     # EUP


# ---------------------------------------------------------------------------
# Kernel bodies
# ---------------------------------------------------------------------------

def _fused_kernel(w_ref, x_ref, o_ref, p_ref, *,
                  width, spatial, padl, kh, kw, inv_c):
    """One batch image per grid step: pool -> conv -> sigmoid -> x * att.
    x is streamed from HBM exactly once (lane-dense (1, C, H*W) block)."""
    # Channel pooling (PyTorch order: channel 0 = max, channel 1 = mean).
    pool_max = jnp.max(x_ref[...], axis=1).astype(jnp.float32)              # (1, S)
    pool_mean = jnp.sum(x_ref[...].astype(jnp.float32), axis=1) * inv_c     # (1, S)

    # Flattened, zero-padded pooled map in VMEM scratch.
    p_ref[...] = jnp.zeros(p_ref.shape, p_ref.dtype)
    p_ref[0:1, padl:padl + spatial] = pool_max
    p_ref[1:2, padl:padl + spatial] = pool_mean

    att = _conv_sigmoid_flat(w_ref, p_ref, spatial=spatial, width=width,
                             padl=padl, kh=kh, kw=kw)                        # (1, S)

    # Scale.  Multiply in x's dtype (bf16 fast path on v6e/v7x); the attention
    # itself was computed in f32.
    o_ref[...] = x_ref[...] * att.astype(o_ref.dtype)[:, None, :]


def _pool_ctile_kernel(x_ref, pooled_ref, *, inv_c):
    """Fallback pool: channel max / sum accumulated across C tiles into a
    VMEM-resident (1, 2, S) output block; mean finalised on the last tile."""
    kc = pl.program_id(1)
    part_max = jnp.max(x_ref[...], axis=1, keepdims=True).astype(jnp.float32)
    part_sum = jnp.sum(x_ref[...].astype(jnp.float32), axis=1, keepdims=True)

    @pl.when(kc == 0)
    def _():
        pooled_ref[:, 0:1, :] = part_max
        pooled_ref[:, 1:2, :] = part_sum

    @pl.when(kc > 0)
    def _():
        pooled_ref[:, 0:1, :] = jnp.maximum(pooled_ref[:, 0:1, :], part_max)
        pooled_ref[:, 1:2, :] = pooled_ref[:, 1:2, :] + part_sum

    @pl.when(kc == pl.num_programs(1) - 1)
    def _():
        pooled_ref[:, 1:2, :] = pooled_ref[:, 1:2, :] * inv_c


def _conv_scale_ctile_kernel(w_ref, pooled_ref, x_ref, o_ref, p_ref, att_ref, *,
                             width, spatial, padl, kh, kw):
    """Fallback conv + sigmoid (computed once per batch at the first C tile and
    cached in a persistent VMEM scratch) followed by the lane-dense scale."""
    kc = pl.program_id(1)

    @pl.when(kc == 0)
    def _():
        p_ref[...] = jnp.zeros(p_ref.shape, p_ref.dtype)
        p_ref[:, padl:padl + spatial] = pooled_ref[...][0]        # (2, S)
        att_ref[...] = _conv_sigmoid_flat(w_ref, p_ref, spatial=spatial,
                                          width=width, padl=padl, kh=kh, kw=kw)

    o_ref[...] = x_ref[...] * att_ref[...].astype(o_ref.dtype)[:, None, :]


# ---------------------------------------------------------------------------
# Host wrapper
# ---------------------------------------------------------------------------

def spatial_attention(x, w7, *, force_split=False, split_tc=None):
    """Forward pass of SpatialAttention.
    x  : (B, C, H, W)
    w7 : (1, 2, kh, kw) Conv2d weight (no bias)."""
    b, c, h, w = x.shape
    _, _, kh, kw = w7.shape
    spatial, padl, plen = _flat_geometry(h, w, kh, kw)
    itemsize = jnp.dtype(x.dtype).itemsize

    x_flat = x.reshape(b, c, spatial)                 # free: contiguous reshape
    w_flat = w7.reshape(-1).astype(jnp.float32)       # (2*kh*kw,) scalar taps

    limit, budget = _vmem_limits()
    compiler_1d = pltpu.CompilerParams(
        dimension_semantics=("parallel",), vmem_limit_bytes=limit)
    compiler_2d = pltpu.CompilerParams(
        dimension_semantics=("parallel", "arbitrary"), vmem_limit_bytes=limit)

    scratch_bytes = 2 * plen * 4 + spatial * 4
    fused_bytes = 4 * c * spatial * itemsize + scratch_bytes   # 2x in + 2x out bufs

    if fused_bytes <= budget and not force_split:
        # --- fused single pass over x: ~2*|x| HBM traffic, fully lane-dense ---
        out_flat = pl.pallas_call(
            functools.partial(_fused_kernel, width=w, spatial=spatial, padl=padl,
                              kh=kh, kw=kw, inv_c=1.0 / c),
            grid=(b,),
            in_specs=[
                pl.BlockSpec(memory_space=pltpu.MemorySpace.SMEM),       # weights
                pl.BlockSpec((1, c, spatial), lambda bi: (bi, 0, 0)),    # x (flat)
            ],
            out_specs=pl.BlockSpec((1, c, spatial), lambda bi: (bi, 0, 0)),
            out_shape=jax.ShapeDtypeStruct((b, c, spatial), x.dtype),
            scratch_shapes=[pltpu.VMEM((2, plen), jnp.float32)],
            compiler_params=compiler_1d,
        )(w_flat, x_flat)
        return out_flat.reshape(b, c, h, w)

    # --- fallback for very large C*H*W: tile the channel axis (no halos) ---
    resident = 2 * 2 * spatial * 4 + scratch_bytes
    tc = split_tc if split_tc is not None else _pick_c_tile(
        c, spatial, itemsize, resident, budget)
    assert c % tc == 0, (c, tc)
    nc = c // tc

    pooled = pl.pallas_call(
        functools.partial(_pool_ctile_kernel, inv_c=1.0 / c),
        grid=(b, nc),
        in_specs=[pl.BlockSpec((1, tc, spatial), lambda bi, kc: (bi, kc, 0))],
        out_specs=pl.BlockSpec((1, 2, spatial), lambda bi, kc: (bi, 0, 0)),
        out_shape=jax.ShapeDtypeStruct((b, 2, spatial), jnp.float32),
        compiler_params=compiler_2d,
    )(x_flat)

    out_flat = pl.pallas_call(
        functools.partial(_conv_scale_ctile_kernel, width=w, spatial=spatial,
                          padl=padl, kh=kh, kw=kw),
        grid=(b, nc),
        in_specs=[
            pl.BlockSpec(memory_space=pltpu.MemorySpace.SMEM),               # weights
            pl.BlockSpec((1, 2, spatial), lambda bi, kc: (bi, 0, 0)),        # pooled
            pl.BlockSpec((1, tc, spatial), lambda bi, kc: (bi, kc, 0)),      # x tile
        ],
        out_specs=pl.BlockSpec((1, tc, spatial), lambda bi, kc: (bi, kc, 0)),
        out_shape=jax.ShapeDtypeStruct((b, c, spatial), x.dtype),
        scratch_shapes=[pltpu.VMEM((2, plen), jnp.float32),
                        pltpu.VMEM((1, spatial), jnp.float32)],
        compiler_params=compiler_2d,
    )(w_flat, pooled, x_flat)
    return out_flat.reshape(b, c, h, w)


# ---------------------------------------------------------------------------
# Pure-JAX reference (for correctness check)
# ---------------------------------------------------------------------------

def _reference(x, w7):
    mx = jnp.max(x, axis=1, keepdims=True)
    mean = jnp.mean(x, axis=1, keepdims=True)
    pool = jnp.concatenate([mx, mean], axis=1)        # channel 0 = max, 1 = mean
    ph, pw = w7.shape[2] // 2, w7.shape[3] // 2
    s = jax.lax.conv_general_dilated(
        pool, w7, window_strides=(1, 1),
        padding=((ph, ph), (pw, pw)),
        dimension_numbers=("NCHW", "OIHW", "NCHW"))
    return x * jax.nn.sigmoid(s)


# ---------------------------------------------------------------------------
# Main
# ---------------------------------------------------------------------------

if __name__ == "__main__":
    key = jax.random.PRNGKey(0)
    k1, k2, k3 = jax.random.split(key, 3)

    B, C, H, W = 2, 4, 16, 16
    x = jax.random.normal(k1, (B, C, H, W), jnp.float32)
    w7 = jax.random.normal(k2, (1, 2, 7, 7), jnp.float32) * math.sqrt(2.0 / 98.0)

    # Fused single-pass path (default for shapes that fit VMEM).
    fwd = jax.jit(spatial_attention)
    out = jax.block_until_ready(fwd(x, w7))
    assert out.shape == (B, C, H, W), out.shape
    ref = _reference(x, w7)
    err = float(jnp.max(jnp.abs(out - ref)))
    assert bool(jnp.allclose(out, ref, atol=1e-4, rtol=1e-4)), err

    # Exercise the C-tiled fallback path (used when a whole image exceeds the
    # VMEM block budget) on a slightly larger channel count so nc > 1.
    C2 = 16
    x2 = jax.random.normal(k3, (B, C2, H, W), jnp.float32)
    fwd_split = jax.jit(functools.partial(spatial_attention,
                                          force_split=True, split_tc=8))
    out2 = jax.block_until_ready(fwd_split(x2, w7))
    ref2 = _reference(x2, w7)
    err2 = float(jnp.max(jnp.abs(out2 - ref2)))
    assert bool(jnp.allclose(out2, ref2, atol=1e-4, rtol=1e-4)), err2

    print("KERNEL_OK")
</pallas_src>

<mosaic_0001>
module attributes {stable_mosaic.version = 11 : i64} {
  func.func @_fused_kernel(%arg0: i32, %arg1: memref<98xf32, #tpu.memory_space<smem>>, %arg2: memref<1x4x256xf32, #tpu.memory_space<vmem>>, %arg3: memref<1x4x256xf32, #tpu.memory_space<vmem>>, %arg4: memref<2x443xf32, #tpu.memory_space<vmem>>) attributes {dimension_semantics = [#tpu.dimension_semantics<parallel>], iteration_bounds = array<i64: 2>, scalar_prefetch = 0 : i64, scratch_operands = 1 : i64, tpu.core_type = #tpu.core_type<tc>, window_params = [{transform_indices = @transform_0, window_bounds = array<i64: 98>}, {transform_indices = @transform_1, window_bounds = array<i64: 1, 4, 256>}, {transform_indices = @transform_2, window_bounds = array<i64: 1, 4, 256>}]} {
    %c0 = arith.constant 0 : index
    %c0_0 = arith.constant 0 : index
    %c0_1 = arith.constant 0 : index
    %0 = vector.load %arg2[%c0, %c0_0, %c0_1] : memref<1x4x256xf32, #tpu.memory_space<vmem>>, vector<1x4x256xf32>
    %cst = arith.constant dense<0xFF800000> : vector<1x256xf32>
    %1 = vector.multi_reduction <maximumf>, %0, %cst [1] : vector<1x4x256xf32> to vector<1x256xf32>
    %c0_2 = arith.constant 0 : index
    %c0_3 = arith.constant 0 : index
    %c0_4 = arith.constant 0 : index
    %2 = vector.load %arg2[%c0_2, %c0_3, %c0_4] : memref<1x4x256xf32, #tpu.memory_space<vmem>>, vector<1x4x256xf32>
    %cst_5 = arith.constant dense<0.000000e+00> : vector<1x256xf32>
    %3 = vector.multi_reduction <add>, %2, %cst_5 [1] : vector<1x4x256xf32> to vector<1x256xf32>
    %cst_6 = arith.constant 2.500000e-01 : f32
    %4 = vector.broadcast %cst_6 : f32 to vector<1x256xf32>
    %5 = arith.mulf %3, %4 : vector<1x256xf32>
    %cst_7 = arith.constant 0.000000e+00 : f32
    %6 = vector.broadcast %cst_7 : f32 to vector<2x443xf32>
    %c0_8 = arith.constant 0 : index
    %c0_9 = arith.constant 0 : index
    %7 = vector.load %arg4[%c0_8, %c0_9] : memref<2x443xf32, #tpu.memory_space<vmem>>, vector<2x443xf32>
    tpu.vector_store %arg4[%c0_8, %c0_9], %6 {strides = array<i32>} : memref<2x443xf32, #tpu.memory_space<vmem>>, vector<2x443xf32>,
    %c0_10 = arith.constant 0 : index
    %c128 = arith.constant 128 : index
    %8 = vector.load %arg4[%c0_10, %c128] : memref<2x443xf32, #tpu.memory_space<vmem>>, vector<1x256xf32>
    tpu.vector_store %arg4[%c0_10, %c128], %1 {strides = array<i32>} : memref<2x443xf32, #tpu.memory_space<vmem>>, vector<1x256xf32>,
    %c1 = arith.constant 1 : index
    %c128_11 = arith.constant 128 : index
    %9 = vector.load %arg4[%c1, %c128_11] : memref<2x443xf32, #tpu.memory_space<vmem>>, vector<1x256xf32>
    tpu.vector_store %arg4[%c1, %c128_11], %5 {strides = array<i32>} : memref<2x443xf32, #tpu.memory_space<vmem>>, vector<1x256xf32>,
    %10 = tpu.iota {dimensions = array<i32: 1>} : vector<1x256xi32>
    %c16_i32 = arith.constant 16 : i32
    %c0_i32 = arith.constant 0 : i32
    %11 = arith.cmpi eq, %c16_i32, %c0_i32 : i32
    %c1_i32 = arith.constant 1 : i32
    %12 = arith.select %11, %c1_i32, %c16_i32 : i32
    %13 = vector.broadcast %12 : i32 to vector<1x256xi32>
    %14 = arith.remsi %10, %13 : vector<1x256xi32>
    %c0_i32_12 = arith.constant 0 : i32
    %15 = vector.broadcast %c0_i32_12 : i32 to vector<1x256xi32>
    %16 = arith.cmpi ne, %14, %15 : vector<1x256xi32>
    %c0_i32_13 = arith.constant 0 : i32
    %17 = vector.broadcast %c0_i32_13 : i32 to vector<1x256xi32>
    %18 = arith.cmpi slt, %14, %17 : vector<1x256xi32>
    %c0_i32_14 = arith.constant 0 : i32
    %19 = arith.cmpi slt, %12, %c0_i32_14 : i32
    %20 = vector.broadcast %19 : i1 to vector<1x256xi1>
    %21 = vector.broadcast %20 : vector<1x256xi1> to vector<1x256xi1>
    %22 = arith.xori %18, %21 : vector<1x256xi1>
    %23 = arith.andi %22, %16 : vector<1x256xi1>
    %24 = vector.broadcast %12 : i32 to vector<1x256xi32>
    %25 = arith.addi %14, %24 : vector<1x256xi32>
    %26 = arith.select %23, %25, %14 : vector<1x256xi1>, vector<1x256xi32>
    %c0_15 = arith.constant 0 : index
    %27 = memref.load %arg1[%c0_15] : memref<98xf32, #tpu.memory_space<smem>>
    %c0_16 = arith.constant 0 : index
    %c77 = arith.constant 77 : index
    %28 = vector.load %arg4[%c0_16, %c77] : memref<2x443xf32, #tpu.memory_space<vmem>>, vector<1x256xf32>
    %29 = vector.broadcast %27 : f32 to vector<1x256xf32>
    %30 = arith.mulf %29, %28 : vector<1x256xf32>
    %c7 = arith.constant 7 : index
    %31 = memref.load %arg1[%c7] : memref<98xf32, #tpu.memory_space<smem>>
    %c0_17 = arith.constant 0 : index
    %c93 = arith.constant 93 : index
    %32 = vector.load %arg4[%c0_17, %c93] : memref<2x443xf32, #tpu.memory_space<vmem>>, vector<1x256xf32>
    %33 = vector.broadcast %31 : f32 to vector<1x256xf32>
    %34 = arith.mulf %33, %32 : vector<1x256xf32>
    %35 = arith.addf %30, %34 : vector<1x256xf32>
    %c14 = arith.constant 14 : index
    %36 = memref.load %arg1[%c14] : memref<98xf32, #tpu.memory_space<smem>>
    %c0_18 = arith.constant 0 : index
    %c109 = arith.constant 109 : index
    %37 = vector.load %arg4[%c0_18, %c109] : memref<2x443xf32, #tpu.memory_space<vmem>>, vector<1x256xf32>
    %38 = vector.broadcast %36 : f32 to vector<1x256xf32>
    %39 = arith.mulf %38, %37 : vector<1x256xf32>
    %40 = arith.addf %35, %39 : vector<1x256xf32>
    %c21 = arith.constant 21 : index
    %41 = memref.load %arg1[%c21] : memref<98xf32, #tpu.memory_space<smem>>
    %c0_19 = arith.constant 0 : index
    %c125 = arith.constant 125 : index
    %42 = vector.load %arg4[%c0_19, %c125] : memref<2x443xf32, #tpu.memory_space<vmem>>, vector<1x256xf32>
    %43 = vector.broadcast %41 : f32 to vector<1x256xf32>
    %44 = arith.mulf %43, %42 : vector<1x256xf32>
    %45 = arith.addf %40, %44 : vector<1x256xf32>
    %c28 = arith.constant 28 : index
    %46 = memref.load %arg1[%c28] : memref<98xf32, #tpu.memory_space<smem>>
    %c0_20 = arith.constant 0 : index
    %c141 = arith.constant 141 : index
    %47 = vector.load %arg4[%c0_20, %c141] : memref<2x443xf32, #tpu.memory_space<vmem>>, vector<1x256xf32>
    %48 = vector.broadcast %46 : f32 to vector<1x256xf32>
    %49 = arith.mulf %48, %47 : vector<1x256xf32>
    %50 = arith.addf %45, %49 : vector<1x256xf32>
    %c35 = arith.constant 35 : index
    %51 = memref.load %arg1[%c35] : memref<98xf32, #tpu.memory_space<smem>>
    %c0_21 = arith.constant 0 : index
    %c157 = arith.constant 157 : index
    %52 = vector.load %arg4[%c0_21, %c157] : memref<2x443xf32, #tpu.memory_space<vmem>>, vector<1x256xf32>
    %53 = vector.broadcast %51 : f32 to vector<1x256xf32>
    %54 = arith.mulf %53, %52 : vector<1x256xf32>
    %55 = arith.addf %50, %54 : vector<1x256xf32>
    %c42 = arith.constant 42 : index
    %56 = memref.load %arg1[%c42] : memref<98xf32, #tpu.memory_space<smem>>
    %c0_22 = arith.constant 0 : index
    %c173 = arith.constant 173 : index
    %57 = vector.load %arg4[%c0_22, %c173] : memref<2x443xf32, #tpu.memory_space<vmem>>, vector<1x256xf32>
    %58 = vector.broadcast %56 : f32 to vector<1x256xf32>
    %59 = arith.mulf %58, %57 : vector<1x256xf32>
    %60 = arith.addf %55, %59 : vector<1x256xf32>
    %c49 = arith.constant 49 : index
    %61 = memref.load %arg1[%c49] : memref<98xf32, #tpu.memory_space<smem>>
    %c1_23 = arith.constant 1 : index
    %c77_24 = arith.constant 77 : index
    %62 = vector.load %arg4[%c1_23, %c77_24] : memref<2x443xf32, #tpu.memory_space<vmem>>, vector<1x256xf32>
    %63 = vector.broadcast %61 : f32 to vector<1x256xf32>
    %64 = arith.mulf %63, %62 : vector<1x256xf32>
    %65 = arith.addf %60, %64 : vector<1x256xf32>
    %c56 = arith.constant 56 : index
    %66 = memref.load %arg1[%c56] : memref<98xf32, #tpu.memory_space<smem>>
    %c1_25 = arith.constant 1 : index
    %c93_26 = arith.constant 93 : index
    %67 = vector.load %arg4[%c1_25, %c93_26] : memref<2x443xf32, #tpu.memory_space<vmem>>, vector<1x256xf32>
    %68 = vector.broadcast %66 : f32 to vector<1x256xf32>
    %69 = arith.mulf %68, %67 : vector<1x256xf32>
    %70 = arith.addf %65, %69 : vector<1x256xf32>
    %c63 = arith.constant 63 : index
    %71 = memref.load %arg1[%c63] : memref<98xf32, #tpu.memory_space<smem>>
    %c1_27 = arith.constant 1 : index
    %c109_28 = arith.constant 109 : index
    %72 = vector.load %arg4[%c1_27, %c109_28] : memref<2x443xf32, #tpu.memory_space<vmem>>, vector<1x256xf32>
    %73 = vector.broadcast %71 : f32 to vector<1x256xf32>
    %74 = arith.mulf %73, %72 : vector<1x256xf32>
    %75 = arith.addf %70, %74 : vector<1x256xf32>
    %c70 = arith.constant 70 : index
    %76 = memref.load %arg1[%c70] : memref<98xf32, #tpu.memory_space<smem>>
    %c1_29 = arith.constant 1 : index
    %c125_30 = arith.constant 125 : index
    %77 = vector.load %arg4[%c1_29, %c125_30] : memref<2x443xf32, #tpu.memory_space<vmem>>, vector<1x256xf32>
    %78 = vector.broadcast %76 : f32 to vector<1x256xf32>
    %79 = arith.mulf %78, %77 : vector<1x256xf32>
    %80 = arith.addf %75, %79 : vector<1x256xf32>
    %c77_31 = arith.constant 77 : index
    %81 = memref.load %arg1[%c77_31] : memref<98xf32, #tpu.memory_space<smem>>
    %c1_32 = arith.constant 1 : index
    %c141_33 = arith.constant 141 : index
    %82 = vector.load %arg4[%c1_32, %c141_33] : memref<2x443xf32, #tpu.memory_space<vmem>>, vector<1x256xf32>
    %83 = vector.broadcast %81 : f32 to vector<1x256xf32>
    %84 = arith.mulf %83, %82 : vector<1x256xf32>
    %85 = arith.addf %80, %84 : vector<1x256xf32>
    %c84 = arith.constant 84 : index
    %86 = memref.load %arg1[%c84] : memref<98xf32, #tpu.memory_space<smem>>
    %c1_34 = arith.constant 1 : index
    %c157_35 = arith.constant 157 : index
    %87 = vector.load %arg4[%c1_34, %c157_35] : memref<2x443xf32, #tpu.memory_space<vmem>>, vector<1x256xf32>
    %88 = vector.broadcast %86 : f32 to vector<1x256xf32>
    %89 = arith.mulf %88, %87 : vector<1x256xf32>
    %90 = arith.addf %85, %89 : vector<1x256xf32>
    %c91 = arith.constant 91 : index
    %91 = memref.load %arg1[%c91] : memref<98xf32, #tpu.memory_space<smem>>
    %c1_36 = arith.constant 1 : index
    %c173_37 = arith.constant 173 : index
    %92 = vector.load %arg4[%c1_36, %c173_37] : memref<2x443xf32, #tpu.memory_space<vmem>>, vector<1x256xf32>
    %93 = vector.broadcast %91 : f32 to vector<1x256xf32>
    %94 = arith.mulf %93, %92 : vector<1x256xf32>
    %95 = arith.addf %90, %94 : vector<1x256xf32>
    %c3_i32 = arith.constant 3 : i32
    %96 = vector.broadcast %c3_i32 : i32 to vector<1x256xi32>
    %97 = arith.cmpi sge, %26, %96 : vector<1x256xi32>
    %c19_i32 = arith.constant 19 : i32
    %98 = vector.broadcast %c19_i32 : i32 to vector<1x256xi32>
    %99 = arith.cmpi slt, %26, %98 : vector<1x256xi32>
    %100 = arith.andi %97, %99 : vector<1x256xi1>
    %cst_38 = arith.constant 0.000000e+00 : f32
    %101 = vector.broadcast %cst_38 : f32 to vector<1x256xf32>
    %102 = arith.select %100, %95, %101 : vector<1x256xi1>, vector<1x256xf32>
    %c1_39 = arith.constant 1 : index
    %103 = memref.load %arg1[%c1_39] : memref<98xf32, #tpu.memory_space<smem>>
    %c0_40 = arith.constant 0 : index
    %c78 = arith.constant 78 : index
    %104 = vector.load %arg4[%c0_40, %c78] : memref<2x443xf32, #tpu.memory_space<vmem>>, vector<1x256xf32>
    %105 = vector.broadcast %103 : f32 to vector<1x256xf32>
    %106 = arith.mulf %105, %104 : vector<1x256xf32>
    %c8 = arith.constant 8 : index
    %107 = memref.load %arg1[%c8] : memref<98xf32, #tpu.memory_space<smem>>
    %c0_41 = arith.constant 0 : index
    %c94 = arith.constant 94 : index
    %108 = vector.load %arg4[%c0_41, %c94] : memref<2x443xf32, #tpu.memory_space<vmem>>, vector<1x256xf32>
    %109 = vector.broadcast %107 : f32 to vector<1x256xf32>
    %110 = arith.mulf %109, %108 : vector<1x256xf32>
    %111 = arith.addf %106, %110 : vector<1x256xf32>
    %c15 = arith.constant 15 : index
    %112 = memref.load %arg1[%c15] : memref<98xf32, #tpu.memory_space<smem>>
    %c0_42 = arith.constant 0 : index
    %c110 = arith.constant 110 : index
    %113 = vector.load %arg4[%c0_42, %c110] : memref<2x443xf32, #tpu.memory_space<vmem>>, vector<1x256xf32>
    %114 = vector.broadcast %112 : f32 to vector<1x256xf32>
    %115 = arith.mulf %114, %113 : vector<1x256xf32>
    %116 = arith.addf %111, %115 : vector<1x256xf32>
    %c22 = arith.constant 22 : index
    %117 = memref.load %arg1[%c22] : memref<98xf32, #tpu.memory_space<smem>>
    %c0_43 = arith.constant 0 : index
    %c126 = arith.constant 126 : index
    %118 = vector.load %arg4[%c0_43, %c126] : memref<2x443xf32, #tpu.memory_space<vmem>>, vector<1x256xf32>
    %119 = vector.broadcast %117 : f32 to vector<1x256xf32>
    %120 = arith.mulf %119, %118 : vector<1x256xf32>
    %121 = arith.addf %116, %120 : vector<1x256xf32>
    %c29 = arith.constant 29 : index
    %122 = memref.load %arg1[%c29] : memref<98xf32, #tpu.memory_space<smem>>
    %c0_44 = arith.constant 0 : index
    %c142 = arith.constant 142 : index
    %123 = vector.load %arg4[%c0_44, %c142] : memref<2x443xf32, #tpu.memory_space<vmem>>, vector<1x256xf32>
    %124 = vector.broadcast %122 : f32 to vector<1x256xf32>
    %125 = arith.mulf %124, %123 : vector<1x256xf32>
    %126 = arith.addf %121, %125 : vector<1x256xf32>
    %c36 = arith.constant 36 : index
    %127 = memref.load %arg1[%c36] : memref<98xf32, #tpu.memory_space<smem>>
    %c0_45 = arith.constant 0 : index
    %c158 = arith.constant 158 : index
    %128 = vector.load %arg4[%c0_45, %c158] : memref<2x443xf32, #tpu.memory_space<vmem>>, vector<1x256xf32>
    %129 = vector.broadcast %127 : f32 to vector<1x256xf32>
    %130 = arith.mulf %129, %128 : vector<1x256xf32>
    %131 = arith.addf %126, %130 : vector<1x256xf32>
    %c43 = arith.constant 43 : index
    %132 = memref.load %arg1[%c43] : memref<98xf32, #tpu.memory_space<smem>>
    %c0_46 = arith.constant 0 : index
    %c174 = arith.constant 174 : index
    %133 = vector.load %arg4[%c0_46, %c174] : memref<2x443xf32, #tpu.memory_space<vmem>>, vector<1x256xf32>
    %134 = vector.broadcast %132 : f32 to vector<1x256xf32>
    %135 = arith.mulf %134, %133 : vector<1x256xf32>
    %136 = arith.addf %131, %135 : vector<1x256xf32>
    %c50 = arith.constant 50 : index
    %137 = memref.load %arg1[%c50] : memref<98xf32, #tpu.memory_space<smem>>
    %c1_47 = arith.constant 1 : index
    %c78_48 = arith.constant 78 : index
    %138 = vector.load %arg4[%c1_47, %c78_48] : memref<2x443xf32, #tpu.memory_space<vmem>>, vector<1x256xf32>
    %139 = vector.broadcast %137 : f32 to vector<1x256xf32>
    %140 = arith.mulf %139, %138 : vector<1x256xf32>
    %141 = arith.addf %136, %140 : vector<1x256xf32>
    %c57 = arith.constant 57 : index
    %142 = memref.load %arg1[%c57] : memref<98xf32, #tpu.memory_space<smem>>
    %c1_49 = arith.constant 1 : index
    %c94_50 = arith.constant 94 : index
    %143 = vector.load %arg4[%c1_49, %c94_50] : memref<2x443xf32, #tpu.memory_space<vmem>>, vector<1x256xf32>
    %144 = vector.broadcast %142 : f32 to vector<1x256xf32>
    %145 = arith.mulf %144, %143 : vector<1x256xf32>
    %146 = arith.addf %141, %145 : vector<1x256xf32>
    %c64 = arith.constant 64 : index
    %147 = memref.load %arg1[%c64] : memref<98xf32, #tpu.memory_space<smem>>
    %c1_51 = arith.constant 1 : index
    %c110_52 = arith.constant 110 : index
    %148 = vector.load %arg4[%c1_51, %c110_52] : memref<2x443xf32, #tpu.memory_space<vmem>>, vector<1x256xf32>
    %149 = vector.broadcast %147 : f32 to vector<1x256xf32>
    %150 = arith.mulf %149, %148 : vector<1x256xf32>
    %151 = arith.addf %146, %150 : vector<1x256xf32>
    %c71 = arith.constant 71 : index
    %152 = memref.load %arg1[%c71] : memref<98xf32, #tpu.memory_space<smem>>
    %c1_53 = arith.constant 1 : index
    %c126_54 = arith.constant 126 : index
    %153 = vector.load %arg4[%c1_53, %c126_54] : memref<2x443xf32, #tpu.memory_space<vmem>>, vector<1x256xf32>
    %154 = vector.broadcast %152 : f32 to vector<1x256xf32>
    %155 = arith.mulf %154, %153 : vector<1x256xf32>
    %156 = arith.addf %151, %155 : vector<1x256xf32>
    %c78_55 = arith.constant 78 : index
    %157 = memref.load %arg1[%c78_55] : memref<98xf32, #tpu.memory_space<smem>>
    %c1_56 = arith.constant 1 : index
    %c142_57 = arith.constant 142 : index
    %158 = vector.load %arg4[%c1_56, %c142_57] : memref<2x443xf32, #tpu.memory_space<vmem>>, vector<1x256xf32>
    %159 = vector.broadcast %157 : f32 to vector<1x256xf32>
    %160 = arith.mulf %159, %158 : vector<1x256xf32>
    %161 = arith.addf %156, %160 : vector<1x256xf32>
    %c85 = arith.constant 85 : index
    %162 = memref.load %arg1[%c85] : memref<98xf32, #tpu.memory_space<smem>>
    %c1_58 = arith.constant 1 : index
    %c158_59 = arith.constant 158 : index
    %163 = vector.load %arg4[%c1_58, %c158_59] : memref<2x443xf32, #tpu.memory_space<vmem>>, vector<1x256xf32>
    %164 = vector.broadcast %162 : f32 to vector<1x256xf32>
    %165 = arith.mulf %164, %163 : vector<1x256xf32>
    %166 = arith.addf %161, %165 : vector<1x256xf32>
    %c92 = arith.constant 92 : index
    %167 = memref.load %arg1[%c92] : memref<98xf32, #tpu.memory_space<smem>>
    %c1_60 = arith.constant 1 : index
    %c174_61 = arith.constant 174 : index
    %168 = vector.load %arg4[%c1_60, %c174_61] : memref<2x443xf32, #tpu.memory_space<vmem>>, vector<1x256xf32>
    %169 = vector.broadcast %167 : f32 to vector<1x256xf32>
    %170 = arith.mulf %169, %168 : vector<1x256xf32>
    %171 = arith.addf %166, %170 : vector<1x256xf32>
    %c2_i32 = arith.constant 2 : i32
    %172 = vector.broadcast %c2_i32 : i32 to vector<1x256xi32>
    %173 = arith.cmpi sge, %26, %172 : vector<1x256xi32>
    %c18_i32 = arith.constant 18 : i32
    %174 = vector.broadcast %c18_i32 : i32 to vector<1x256xi32>
    %175 = arith.cmpi slt, %26, %174 : vector<1x256xi32>
    %176 = arith.andi %173, %175 : vector<1x256xi1>
    %cst_62 = arith.constant 0.000000e+00 : f32
    %177 = vector.broadcast %cst_62 : f32 to vector<1x256xf32>
    %178 = arith.select %176, %171, %177 : vector<1x256xi1>, vector<1x256xf32>
    %179 = arith.addf %102, %178 : vector<1x256xf32>
    %c2 = arith.constant 2 : index
    %180 = memref.load %arg1[%c2] : memref<98xf32, #tpu.memory_space<smem>>
    %c0_63 = arith.constant 0 : index
    %c79 = arith.constant 79 : index
    %181 = vector.load %arg4[%c0_63, %c79] : memref<2x443xf32, #tpu.memory_space<vmem>>, vector<1x256xf32>
    %182 = vector.broadcast %180 : f32 to vector<1x256xf32>
    %183 = arith.mulf %182, %181 : vector<1x256xf32>
    %c9 = arith.constant 9 : index
    %184 = memref.load %arg1[%c9] : memref<98xf32, #tpu.memory_space<smem>>
    %c0_64 = arith.constant 0 : index
    %c95 = arith.constant 95 : index
    %185 = vector.load %arg4[%c0_64, %c95] : memref<2x443xf32, #tpu.memory_space<vmem>>, vector<1x256xf32>
    %186 = vector.broadcast %184 : f32 to vector<1x256xf32>
    %187 = arith.mulf %186, %185 : vector<1x256xf32>
    %188 = arith.addf %183, %187 : vector<1x256xf32>
    %c16 = arith.constant 16 : index
    %189 = memref.load %arg1[%c16] : memref<98xf32, #tpu.memory_space<smem>>
    %c0_65 = arith.constant 0 : index
    %c111 = arith.constant 111 : index
    %190 = vector.load %arg4[%c0_65, %c111] : memref<2x443xf32, #tpu.memory_space<vmem>>, vector<1x256xf32>
    %191 = vector.broadcast %189 : f32 to vector<1x256xf32>
    %192 = arith.mulf %191, %190 : vector<1x256xf32>
    %193 = arith.addf %188, %192 : vector<1x256xf32>
    %c23 = arith.constant 23 : index
    %194 = memref.load %arg1[%c23] : memref<98xf32, #tpu.memory_space<smem>>
    %c0_66 = arith.constant 0 : index
    %c127 = arith.constant 127 : index
    %195 = vector.load %arg4[%c0_66, %c127] : memref<2x443xf32, #tpu.memory_space<vmem>>, vector<1x256xf32>
    %196 = vector.broadcast %194 : f32 to vector<1x256xf32>
    %197 = arith.mulf %196, %195 : vector<1x256xf32>
    %198 = arith.addf %193, %197 : vector<1x256xf32>
    %c30 = arith.constant 30 : index
    %199 = memref.load %arg1[%c30] : memref<98xf32, #tpu.memory_space<smem>>
    %c0_67 = arith.constant 0 : index
    %c143 = arith.constant 143 : index
    %200 = vector.load %arg4[%c0_67, %c143] : memref<2x443xf32, #tpu.memory_space<vmem>>, vector<1x256xf32>
    %201 = vector.broadcast %199 : f32 to vector<1x256xf32>
    %202 = arith.mulf %201, %200 : vector<1x256xf32>
    %203 = arith.addf %198, %202 : vector<1x256xf32>
    %c37 = arith.constant 37 : index
    %204 = memref.load %arg1[%c37] : memref<98xf32, #tpu.memory_space<smem>>
    %c0_68 = arith.constant 0 : index
    %c159 = arith.constant 159 : index
    %205 = vector.load %arg4[%c0_68, %c159] : memref<2x443xf32, #tpu.memory_space<vmem>>, vector<1x256xf32>
    %206 = vector.broadcast %204 : f32 to vector<1x256xf32>
    %207 = arith.mulf %206, %205 : vector<1x256xf32>
    %208 = arith.addf %203, %207 : vector<1x256xf32>
    %c44 = arith.constant 44 : index
    %209 = memref.load %arg1[%c44] : memref<98xf32, #tpu.memory_space<smem>>
    %c0_69 = arith.constant 0 : index
    %c175 = arith.constant 175 : index
    %210 = vector.load %arg4[%c0_69, %c175] : memref<2x443xf32, #tpu.memory_space<vmem>>, vector<1x256xf32>
    %211 = vector.broadcast %209 : f32 to vector<1x256xf32>
    %212 = arith.mulf %211, %210 : vector<1x256xf32>
    %213 = arith.addf %208, %212 : vector<1x256xf32>
    %c51 = arith.constant 51 : index
    %214 = memref.load %arg1[%c51] : memref<98xf32, #tpu.memory_space<smem>>
    %c1_70 = arith.constant 1 : index
    %c79_71 = arith.constant 79 : index
    %215 = vector.load %arg4[%c1_70, %c79_71] : memref<2x443xf32, #tpu.memory_space<vmem>>, vector<1x256xf32>
    %216 = vector.broadcast %214 : f32 to vector<1x256xf32>
    %217 = arith.mulf %216, %215 : vector<1x256xf32>
    %218 = arith.addf %213, %217 : vector<1x256xf32>
    %c58 = arith.constant 58 : index
    %219 = memref.load %arg1[%c58] : memref<98xf32, #tpu.memory_space<smem>>
    %c1_72 = arith.constant 1 : index
    %c95_73 = arith.constant 95 : index
    %220 = vector.load %arg4[%c1_72, %c95_73] : memref<2x443xf32, #tpu.memory_space<vmem>>, vector<1x256xf32>
    %221 = vector.broadcast %219 : f32 to vector<1x256xf32>
    %222 = arith.mulf %221, %220 : vector<1x256xf32>
    %223 = arith.addf %218, %222 : vector<1x256xf32>
    %c65 = arith.constant 65 : index
    %224 = memref.load %arg1[%c65] : memref<98xf32, #tpu.memory_space<smem>>
    %c1_74 = arith.constant 1 : index
    %c111_75 = arith.constant 111 : index
    %225 = vector.load %arg4[%c1_74, %c111_75] : memref<2x443xf32, #tpu.memory_space<vmem>>, vector<1x256xf32>
    %226 = vector.broadcast %224 : f32 to vector<1x256xf32>
    %227 = arith.mulf %226, %225 : vector<1x256xf32>
    %228 = arith.addf %223, %227 : vector<1x256xf32>
    %c72 = arith.constant 72 : index
    %229 = memref.load %arg1[%c72] : memref<98xf32, #tpu.memory_space<smem>>
    %c1_76 = arith.constant 1 : index
    %c127_77 = arith.constant 127 : index
    %230 = vector.load %arg4[%c1_76, %c127_77] : memref<2x443xf32, #tpu.memory_space<vmem>>, vector<1x256xf32>
    %231 = vector.broadcast %229 : f32 to vector<1x256xf32>
    %232 = arith.mulf %231, %230 : vector<1x256xf32>
    %233 = arith.addf %228, %232 : vector<1x256xf32>
    %c79_78 = arith.constant 79 : index
    %234 = memref.load %arg1[%c79_78] : memref<98xf32, #tpu.memory_space<smem>>
    %c1_79 = arith.constant 1 : index
    %c143_80 = arith.constant 143 : index
    %235 = vector.load %arg4[%c1_79, %c143_80] : memref<2x443xf32, #tpu.memory_space<vmem>>, vector<1x256xf32>
    %236 = vector.broadcast %234 : f32 to vector<1x256xf32>
    %237 = arith.mulf %236, %235 : vector<1x256xf32>
    %238 = arith.addf %233, %237 : vector<1x256xf32>
    %c86 = arith.constant 86 : index
    %239 = memref.load %arg1[%c86] : memref<98xf32, #tpu.memory_space<smem>>
    %c1_81 = arith.constant 1 : index
    %c159_82 = arith.constant 159 : index
    %240 = vector.load %arg4[%c1_81, %c159_82] : memref<2x443xf32, #tpu.memory_space<vmem>>, vector<1x256xf32>
    %241 = vector.broadcast %239 : f32 to vector<1x256xf32>
    %242 = arith.mulf %241, %240 : vector<1x256xf32>
    %243 = arith.addf %238, %242 : vector<1x256xf32>
    %c93_83 = arith.constant 93 : index
    %244 = memref.load %arg1[%c93_83] : memref<98xf32, #tpu.memory_space<smem>>
    %c1_84 = arith.constant 1 : index
    %c175_85 = arith.constant 175 : index
    %245 = vector.load %arg4[%c1_84, %c175_85] : memref<2x443xf32, #tpu.memory_space<vmem>>, vector<1x256xf32>
    %246 = vector.broadcast %244 : f32 to vector<1x256xf32>
    %247 = arith.mulf %246, %245 : vector<1x256xf32>
    %248 = arith.addf %243, %247 : vector<1x256xf32>
    %c1_i32_86 = arith.constant 1 : i32
    %249 = vector.broadcast %c1_i32_86 : i32 to vector<1x256xi32>
    %250 = arith.cmpi sge, %26, %249 : vector<1x256xi32>
    %c17_i32 = arith.constant 17 : i32
    %251 = vector.broadcast %c17_i32 : i32 to vector<1x256xi32>
    %252 = arith.cmpi slt, %26, %251 : vector<1x256xi32>
    %253 = arith.andi %250, %252 : vector<1x256xi1>
    %cst_87 = arith.constant 0.000000e+00 : f32
    %254 = vector.broadcast %cst_87 : f32 to vector<1x256xf32>
    %255 = arith.select %253, %248, %254 : vector<1x256xi1>, vector<1x256xf32>
    %256 = arith.addf %179, %255 : vector<1x256xf32>
    %c3 = arith.constant 3 : index
    %257 = memref.load %arg1[%c3] : memref<98xf32, #tpu.memory_space<smem>>
    %c0_88 = arith.constant 0 : index
    %c80 = arith.constant 80 : index
    %258 = vector.load %arg4[%c0_88, %c80] : memref<2x443xf32, #tpu.memory_space<vmem>>, vector<1x256xf32>
    %259 = vector.broadcast %257 : f32 to vector<1x256xf32>
    %260 = arith.mulf %259, %258 : vector<1x256xf32>
    %c10 = arith.constant 10 : index
    %261 = memref.load %arg1[%c10] : memref<98xf32, #tpu.memory_space<smem>>
    %c0_89 = arith.constant 0 : index
    %c96 = arith.constant 96 : index
    %262 = vector.load %arg4[%c0_89, %c96] : memref<2x443xf32, #tpu.memory_space<vmem>>, vector<1x256xf32>
    %263 = vector.broadcast %261 : f32 to vector<1x256xf32>
    %264 = arith.mulf %263, %262 : vector<1x256xf32>
    %265 = arith.addf %260, %264 : vector<1x256xf32>
    %c17 = arith.constant 17 : index
    %266 = memref.load %arg1[%c17] : memref<98xf32, #tpu.memory_space<smem>>
    %c0_90 = arith.constant 0 : index
    %c112 = arith.constant 112 : index
    %267 = vector.load %arg4[%c0_90, %c112] : memref<2x443xf32, #tpu.memory_space<vmem>>, vector<1x256xf32>
    %268 = vector.broadcast %266 : f32 to vector<1x256xf32>
    %269 = arith.mulf %268, %267 : vector<1x256xf32>
    %270 = arith.addf %265, %269 : vector<1x256xf32>
    %c24 = arith.constant 24 : index
    %271 = memref.load %arg1[%c24] : memref<98xf32, #tpu.memory_space<smem>>
    %c0_91 = arith.constant 0 : index
    %c128_92 = arith.constant 128 : index
    %272 = vector.load %arg4[%c0_91, %c128_92] : memref<2x443xf32, #tpu.memory_space<vmem>>, vector<1x256xf32>
    %273 = vector.broadcast %271 : f32 to vector<1x256xf32>
    %274 = arith.mulf %273, %272 : vector<1x256xf32>
    %275 = arith.addf %270, %274 : vector<1x256xf32>
    %c31 = arith.constant 31 : index
    %276 = memref.load %arg1[%c31] : memref<98xf32, #tpu.memory_space<smem>>
    %c0_93 = arith.constant 0 : index
    %c144 = arith.constant 144 : index
    %277 = vector.load %arg4[%c0_93, %c144] : memref<2x443xf32, #tpu.memory_space<vmem>>, vector<1x256xf32>
    %278 = vector.broadcast %276 : f32 to vector<1x256xf32>
    %279 = arith.mulf %278, %277 : vector<1x256xf32>
    %280 = arith.addf %275, %279 : vector<1x256xf32>
    %c38 = arith.constant 38 : index
    %281 = memref.load %arg1[%c38] : memref<98xf32, #tpu.memory_space<smem>>
    %c0_94 = arith.constant 0 : index
    %c160 = arith.constant 160 : index
    %282 = vector.load %arg4[%c0_94, %c160] : memref<2x443xf32, #tpu.memory_space<vmem>>, vector<1x256xf32>
    %283 = vector.broadcast %281 : f32 to vector<1x256xf32>
    %284 = arith.mulf %283, %282 : vector<1x256xf32>
    %285 = arith.addf %280, %284 : vector<1x256xf32>
    %c45 = arith.constant 45 : index
    %286 = memref.load %arg1[%c45] : memref<98xf32, #tpu.memory_space<smem>>
    %c0_95 = arith.constant 0 : index
    %c176 = arith.constant 176 : index
    %287 = vector.load %arg4[%c0_95, %c176] : memref<2x443xf32, #tpu.memory_space<vmem>>, vector<1x256xf32>
    %288 = vector.broadcast %286 : f32 to vector<1x256xf32>
    %289 = arith.mulf %288, %287 : vector<1x256xf32>
    %290 = arith.addf %285, %289 : vector<1x256xf32>
    %c52 = arith.constant 52 : index
    %291 = memref.load %arg1[%c52] : memref<98xf32, #tpu.memory_space<smem>>
    %c1_96 = arith.constant 1 : index
    %c80_97 = arith.constant 80 : index
    %292 = vector.load %arg4[%c1_96, %c80_97] : memref<2x443xf32, #tpu.memory_space<vmem>>, vector<1x256xf32>
    %293 = vector.broadcast %291 : f32 to vector<1x256xf32>
    %294 = arith.mulf %293, %292 : vector<1x256xf32>
    %295 = arith.addf %290, %294 : vector<1x256xf32>
    %c59 = arith.constant 59 : index
    %296 = memref.load %arg1[%c59] : memref<98xf32, #tpu.memory_space<smem>>
    %c1_98 = arith.constant 1 : index
    %c96_99 = arith.constant 96 : index
    %297 = vector.load %arg4[%c1_98, %c96_99] : memref<2x443xf32, #tpu.memory_space<vmem>>, vector<1x256xf32>
    %298 = vector.broadcast %296 : f32 to vector<1x256xf32>
    %299 = arith.mulf %298, %297 : vector<1x256xf32>
    %300 = arith.addf %295, %299 : vector<1x256xf32>
    %c66 = arith.constant 66 : index
    %301 = memref.load %arg1[%c66] : memref<98xf32, #tpu.memory_space<smem>>
    %c1_100 = arith.constant 1 : index
    %c112_101 = arith.constant 112 : index
    %302 = vector.load %arg4[%c1_100, %c112_101] : memref<2x443xf32, #tpu.memory_space<vmem>>, vector<1x256xf32>
    %303 = vector.broadcast %301 : f32 to vector<1x256xf32>
    %304 = arith.mulf %303, %302 : vector<1x256xf32>
    %305 = arith.addf %300, %304 : vector<1x256xf32>
    %c73 = arith.constant 73 : index
    %306 = memref.load %arg1[%c73] : memref<98xf32, #tpu.memory_space<smem>>
    %c1_102 = arith.constant 1 : index
    %c128_103 = arith.constant 128 : index
    %307 = vector.load %arg4[%c1_102, %c128_103] : memref<2x443xf32, #tpu.memory_space<vmem>>, vector<1x256xf32>
    %308 = vector.broadcast %306 : f32 to vector<1x256xf32>
    %309 = arith.mulf %308, %307 : vector<1x256xf32>
    %310 = arith.addf %305, %309 : vector<1x256xf32>
    %c80_104 = arith.constant 80 : index
    %311 = memref.load %arg1[%c80_104] : memref<98xf32, #tpu.memory_space<smem>>
    %c1_105 = arith.constant 1 : index
    %c144_106 = arith.constant 144 : index
    %312 = vector.load %arg4[%c1_105, %c144_106] : memref<2x443xf32, #tpu.memory_space<vmem>>, vector<1x256xf32>
    %313 = vector.broadcast %311 : f32 to vector<1x256xf32>
    %314 = arith.mulf %313, %312 : vector<1x256xf32>
    %315 = arith.addf %310, %314 : vector<1x256xf32>
    %c87 = arith.constant 87 : index
    %316 = memref.load %arg1[%c87] : memref<98xf32, #tpu.memory_space<smem>>
    %c1_107 = arith.constant 1 : index
    %c160_108 = arith.constant 160 : index
    %317 = vector.load %arg4[%c1_107, %c160_108] : memref<2x443xf32, #tpu.memory_space<vmem>>, vector<1x256xf32>
    %318 = vector.broadcast %316 : f32 to vector<1x256xf32>
    %319 = arith.mulf %318, %317 : vector<1x256xf32>
    %320 = arith.addf %315, %319 : vector<1x256xf32>
    %c94_109 = arith.constant 94 : index
    %321 = memref.load %arg1[%c94_109] : memref<98xf32, #tpu.memory_space<smem>>
    %c1_110 = arith.constant 1 : index
    %c176_111 = arith.constant 176 : index
    %322 = vector.load %arg4[%c1_110, %c176_111] : memref<2x443xf32, #tpu.memory_space<vmem>>, vector<1x256xf32>
    %323 = vector.broadcast %321 : f32 to vector<1x256xf32>
    %324 = arith.mulf %323, %322 : vector<1x256xf32>
    %325 = arith.addf %320, %324 : vector<1x256xf32>
    %326 = arith.addf %256, %325 : vector<1x256xf32>
    %c4 = arith.constant 4 : index
    %327 = memref.load %arg1[%c4] : memref<98xf32, #tpu.memory_space<smem>>
    %c0_112 = arith.constant 0 : index
    %c81 = arith.constant 81 : index
    %328 = vector.load %arg4[%c0_112, %c81] : memref<2x443xf32, #tpu.memory_space<vmem>>, vector<1x256xf32>
    %329 = vector.broadcast %327 : f32 to vector<1x256xf32>
    %330 = arith.mulf %329, %328 : vector<1x256xf32>
    %c11 = arith.constant 11 : index
    %331 = memref.load %arg1[%c11] : memref<98xf32, #tpu.memory_space<smem>>
    %c0_113 = arith.constant 0 : index
    %c97 = arith.constant 97 : index
    %332 = vector.load %arg4[%c0_113, %c97] : memref<2x443xf32, #tpu.memory_space<vmem>>, vector<1x256xf32>
    %333 = vector.broadcast %331 : f32 to vector<1x256xf32>
    %334 = arith.mulf %333, %332 : vector<1x256xf32>
    %335 = arith.addf %330, %334 : vector<1x256xf32>
    %c18 = arith.constant 18 : index
    %336 = memref.load %arg1[%c18] : memref<98xf32, #tpu.memory_space<smem>>
    %c0_114 = arith.constant 0 : index
    %c113 = arith.constant 113 : index
    %337 = vector.load %arg4[%c0_114, %c113] : memref<2x443xf32, #tpu.memory_space<vmem>>, vector<1x256xf32>
    %338 = vector.broadcast %336 : f32 to vector<1x256xf32>
    %339 = arith.mulf %338, %337 : vector<1x256xf32>
    %340 = arith.addf %335, %339 : vector<1x256xf32>
    %c25 = arith.constant 25 : index
    %341 = memref.load %arg1[%c25] : memref<98xf32, #tpu.memory_space<smem>>
    %c0_115 = arith.constant 0 : index
    %c129 = arith.constant 129 : index
    %342 = vector.load %arg4[%c0_115, %c129] : memref<2x443xf32, #tpu.memory_space<vmem>>, vector<1x256xf32>
    %343 = vector.broadcast %341 : f32 to vector<1x256xf32>
    %344 = arith.mulf %343, %342 : vector<1x256xf32>
    %345 = arith.addf %340, %344 : vector<1x256xf32>
    %c32 = arith.constant 32 : index
    %346 = memref.load %arg1[%c32] : memref<98xf32, #tpu.memory_space<smem>>
    %c0_116 = arith.constant 0 : index
    %c145 = arith.constant 145 : index
    %347 = vector.load %arg4[%c0_116, %c145] : memref<2x443xf32, #tpu.memory_space<vmem>>, vector<1x256xf32>
    %348 = vector.broadcast %346 : f32 to vector<1x256xf32>
    %349 = arith.mulf %348, %347 : vector<1x256xf32>
    %350 = arith.addf %345, %349 : vector<1x256xf32>
    %c39 = arith.constant 39 : index
    %351 = memref.load %arg1[%c39] : memref<98xf32, #tpu.memory_space<smem>>
    %c0_117 = arith.constant 0 : index
    %c161 = arith.constant 161 : index
    %352 = vector.load %arg4[%c0_117, %c161] : memref<2x443xf32, #tpu.memory_space<vmem>>, vector<1x256xf32>
    %353 = vector.broadcast %351 : f32 to vector<1x256xf32>
    %354 = arith.mulf %353, %352 : vector<1x256xf32>
    %355 = arith.addf %350, %354 : vector<1x256xf32>
    %c46 = arith.constant 46 : index
    %356 = memref.load %arg1[%c46] : memref<98xf32, #tpu.memory_space<smem>>
    %c0_118 = arith.constant 0 : index
    %c177 = arith.constant 177 : index
    %357 = vector.load %arg4[%c0_118, %c177] : memref<2x443xf32, #tpu.memory_space<vmem>>, vector<1x256xf32>
    %358 = vector.broadcast %356 : f32 to vector<1x256xf32>
    %359 = arith.mulf %358, %357 : vector<1x256xf32>
    %360 = arith.addf %355, %359 : vector<1x256xf32>
    %c53 = arith.constant 53 : index
    %361 = memref.load %arg1[%c53] : memref<98xf32, #tpu.memory_space<smem>>
    %c1_119 = arith.constant 1 : index
    %c81_120 = arith.constant 81 : index
    %362 = vector.load %arg4[%c1_119, %c81_120] : memref<2x443xf32, #tpu.memory_space<vmem>>, vector<1x256xf32>
    %363 = vector.broadcast %361 : f32 to vector<1x256xf32>
    %364 = arith.mulf %363, %362 : vector<1x256xf32>
    %365 = arith.addf %360, %364 : vector<1x256xf32>
    %c60 = arith.constant 60 : index
    %366 = memref.load %arg1[%c60] : memref<98xf32, #tpu.memory_space<smem>>
    %c1_121 = arith.constant 1 : index
    %c97_122 = arith.constant 97 : index
    %367 = vector.load %arg4[%c1_121, %c97_122] : memref<2x443xf32, #tpu.memory_space<vmem>>, vector<1x256xf32>
    %368 = vector.broadcast %366 : f32 to vector<1x256xf32>
    %369 = arith.mulf %368, %367 : vector<1x256xf32>
    %370 = arith.addf %365, %369 : vector<1x256xf32>
    %c67 = arith.constant 67 : index
    %371 = memref.load %arg1[%c67] : memref<98xf32, #tpu.memory_space<smem>>
    %c1_123 = arith.constant 1 : index
    %c113_124 = arith.constant 113 : index
    %372 = vector.load %arg4[%c1_123, %c113_124] : memref<2x443xf32, #tpu.memory_space<vmem>>, vector<1x256xf32>
    %373 = vector.broadcast %371 : f32 to vector<1x256xf32>
    %374 = arith.mulf %373, %372 : vector<1x256xf32>
    %375 = arith.addf %370, %374 : vector<1x256xf32>
    %c74 = arith.constant 74 : index
    %376 = memref.load %arg1[%c74] : memref<98xf32, #tpu.memory_space<smem>>
    %c1_125 = arith.constant 1 : index
    %c129_126 = arith.constant 129 : index
    %377 = vector.load %arg4[%c1_125, %c129_126] : memref<2x443xf32, #tpu.memory_space<vmem>>, vector<1x256xf32>
    %378 = vector.broadcast %376 : f32 to vector<1x256xf32>
    %379 = arith.mulf %378, %377 : vector<1x256xf32>
    %380 = arith.addf %375, %379 : vector<1x256xf32>
    %c81_127 = arith.constant 81 : index
    %381 = memref.load %arg1[%c81_127] : memref<98xf32, #tpu.memory_space<smem>>
    %c1_128 = arith.constant 1 : index
    %c145_129 = arith.constant 145 : index
    %382 = vector.load %arg4[%c1_128, %c145_129] : memref<2x443xf32, #tpu.memory_space<vmem>>, vector<1x256xf32>
    %383 = vector.broadcast %381 : f32 to vector<1x256xf32>
    %384 = arith.mulf %383, %382 : vector<1x256xf32>
    %385 = arith.addf %380, %384 : vector<1x256xf32>
    %c88 = arith.constant 88 : index
    %386 = memref.load %arg1[%c88] : memref<98xf32, #tpu.memory_space<smem>>
    %c1_130 = arith.constant 1 : index
    %c161_131 = arith.constant 161 : index
    %387 = vector.load %arg4[%c1_130, %c161_131] : memref<2x443xf32, #tpu.memory_space<vmem>>, vector<1x256xf32>
    %388 = vector.broadcast %386 : f32 to vector<1x256xf32>
    %389 = arith.mulf %388, %387 : vector<1x256xf32>
    %390 = arith.addf %385, %389 : vector<1x256xf32>
    %c95_132 = arith.constant 95 : index
    %391 = memref.load %arg1[%c95_132] : memref<98xf32, #tpu.memory_space<smem>>
    %c1_133 = arith.constant 1 : index
    %c177_134 = arith.constant 177 : index
    %392 = vector.load %arg4[%c1_133, %c177_134] : memref<2x443xf32, #tpu.memory_space<vmem>>, vector<1x256xf32>
    %393 = vector.broadcast %391 : f32 to vector<1x256xf32>
    %394 = arith.mulf %393, %392 : vector<1x256xf32>
    %395 = arith.addf %390, %394 : vector<1x256xf32>
    %c-1_i32 = arith.constant -1 : i32
    %396 = vector.broadcast %c-1_i32 : i32 to vector<1x256xi32>
    %397 = arith.cmpi sge, %26, %396 : vector<1x256xi32>
    %c15_i32 = arith.constant 15 : i32
    %398 = vector.broadcast %c15_i32 : i32 to vector<1x256xi32>
    %399 = arith.cmpi slt, %26, %398 : vector<1x256xi32>
    %400 = arith.andi %397, %399 : vector<1x256xi1>
    %cst_135 = arith.constant 0.000000e+00 : f32
    %401 = vector.broadcast %cst_135 : f32 to vector<1x256xf32>
    %402 = arith.select %400, %395, %401 : vector<1x256xi1>, vector<1x256xf32>
    %403 = arith.addf %326, %402 : vector<1x256xf32>
    %c5 = arith.constant 5 : index
    %404 = memref.load %arg1[%c5] : memref<98xf32, #tpu.memory_space<smem>>
    %c0_136 = arith.constant 0 : index
    %c82 = arith.constant 82 : index
    %405 = vector.load %arg4[%c0_136, %c82] : memref<2x443xf32, #tpu.memory_space<vmem>>, vector<1x256xf32>
    %406 = vector.broadcast %404 : f32 to vector<1x256xf32>
    %407 = arith.mulf %406, %405 : vector<1x256xf32>
    %c12 = arith.constant 12 : index
    %408 = memref.load %arg1[%c12] : memref<98xf32, #tpu.memory_space<smem>>
    %c0_137 = arith.constant 0 : index
    %c98 = arith.constant 98 : index
    %409 = vector.load %arg4[%c0_137, %c98] : memref<2x443xf32, #tpu.memory_space<vmem>>, vector<1x256xf32>
    %410 = vector.broadcast %408 : f32 to vector<1x256xf32>
    %411 = arith.mulf %410, %409 : vector<1x256xf32>
    %412 = arith.addf %407, %411 : vector<1x256xf32>
    %c19 = arith.constant 19 : index
    %413 = memref.load %arg1[%c19] : memref<98xf32, #tpu.memory_space<smem>>
    %c0_138 = arith.constant 0 : index
    %c114 = arith.constant 114 : index
    %414 = vector.load %arg4[%c0_138, %c114] : memref<2x443xf32, #tpu.memory_space<vmem>>, vector<1x256xf32>
    %415 = vector.broadcast %413 : f32 to vector<1x256xf32>
    %416 = arith.mulf %415, %414 : vector<1x256xf32>
    %417 = arith.addf %412, %416 : vector<1x256xf32>
    %c26 = arith.constant 26 : index
    %418 = memref.load %arg1[%c26] : memref<98xf32, #tpu.memory_space<smem>>
    %c0_139 = arith.constant 0 : index
    %c130 = arith.constant 130 : index
    %419 = vector.load %arg4[%c0_139, %c130] : memref<2x443xf32, #tpu.memory_space<vmem>>, vector<1x256xf32>
    %420 = vector.broadcast %418 : f32 to vector<1x256xf32>
    %421 = arith.mulf %420, %419 : vector<1x256xf32>
    %422 = arith.addf %417, %421 : vector<1x256xf32>
    %c33 = arith.constant 33 : index
    %423 = memref.load %arg1[%c33] : memref<98xf32, #tpu.memory_space<smem>>
    %c0_140 = arith.constant 0 : index
    %c146 = arith.constant 146 : index
    %424 = vector.load %arg4[%c0_140, %c146] : memref<2x443xf32, #tpu.memory_space<vmem>>, vector<1x256xf32>
    %425 = vector.broadcast %423 : f32 to vector<1x256xf32>
    %426 = arith.mulf %425, %424 : vector<1x256xf32>
    %427 = arith.addf %422, %426 : vector<1x256xf32>
    %c40 = arith.constant 40 : index
    %428 = memref.load %arg1[%c40] : memref<98xf32, #tpu.memory_space<smem>>
    %c0_141 = arith.constant 0 : index
    %c162 = arith.constant 162 : index
    %429 = vector.load %arg4[%c0_141, %c162] : memref<2x443xf32, #tpu.memory_space<vmem>>, vector<1x256xf32>
    %430 = vector.broadcast %428 : f32 to vector<1x256xf32>
    %431 = arith.mulf %430, %429 : vector<1x256xf32>
    %432 = arith.addf %427, %431 : vector<1x256xf32>
    %c47 = arith.constant 47 : index
    %433 = memref.load %arg1[%c47] : memref<98xf32, #tpu.memory_space<smem>>
    %c0_142 = arith.constant 0 : index
    %c178 = arith.constant 178 : index
    %434 = vector.load %arg4[%c0_142, %c178] : memref<2x443xf32, #tpu.memory_space<vmem>>, vector<1x256xf32>
    %435 = vector.broadcast %433 : f32 to vector<1x256xf32>
    %436 = arith.mulf %435, %434 : vector<1x256xf32>
    %437 = arith.addf %432, %436 : vector<1x256xf32>
    %c54 = arith.constant 54 : index
    %438 = memref.load %arg1[%c54] : memref<98xf32, #tpu.memory_space<smem>>
    %c1_143 = arith.constant 1 : index
    %c82_144 = arith.constant 82 : index
    %439 = vector.load %arg4[%c1_143, %c82_144] : memref<2x443xf32, #tpu.memory_space<vmem>>, vector<1x256xf32>
    %440 = vector.broadcast %438 : f32 to vector<1x256xf32>
    %441 = arith.mulf %440, %439 : vector<1x256xf32>
    %442 = arith.addf %437, %441 : vector<1x256xf32>
    %c61 = arith.constant 61 : index
    %443 = memref.load %arg1[%c61] : memref<98xf32, #tpu.memory_space<smem>>
    %c1_145 = arith.constant 1 : index
    %c98_146 = arith.constant 98 : index
    %444 = vector.load %arg4[%c1_145, %c98_146] : memref<2x443xf32, #tpu.memory_space<vmem>>, vector<1x256xf32>
    %445 = vector.broadcast %443 : f32 to vector<1x256xf32>
    %446 = arith.mulf %445, %444 : vector<1x256xf32>
    %447 = arith.addf %442, %446 : vector<1x256xf32>
    %c68 = arith.constant 68 : index
    %448 = memref.load %arg1[%c68] : memref<98xf32, #tpu.memory_space<smem>>
    %c1_147 = arith.constant 1 : index
    %c114_148 = arith.constant 114 : index
    %449 = vector.load %arg4[%c1_147, %c114_148] : memref<2x443xf32, #tpu.memory_space<vmem>>, vector<1x256xf32>
    %450 = vector.broadcast %448 : f32 to vector<1x256xf32>
    %451 = arith.mulf %450, %449 : vector<1x256xf32>
    %452 = arith.addf %447, %451 : vector<1x256xf32>
    %c75 = arith.constant 75 : index
    %453 = memref.load %arg1[%c75] : memref<98xf32, #tpu.memory_space<smem>>
    %c1_149 = arith.constant 1 : index
    %c130_150 = arith.constant 130 : index
    %454 = vector.load %arg4[%c1_149, %c130_150] : memref<2x443xf32, #tpu.memory_space<vmem>>, vector<1x256xf32>
    %455 = vector.broadcast %453 : f32 to vector<1x256xf32>
    %456 = arith.mulf %455, %454 : vector<1x256xf32>
    %457 = arith.addf %452, %456 : vector<1x256xf32>
    %c82_151 = arith.constant 82 : index
    %458 = memref.load %arg1[%c82_151] : memref<98xf32, #tpu.memory_space<smem>>
    %c1_152 = arith.constant 1 : index
    %c146_153 = arith.constant 146 : index
    %459 = vector.load %arg4[%c1_152, %c146_153] : memref<2x443xf32, #tpu.memory_space<vmem>>, vector<1x256xf32>
    %460 = vector.broadcast %458 : f32 to vector<1x256xf32>
    %461 = arith.mulf %460, %459 : vector<1x256xf32>
    %462 = arith.addf %457, %461 : vector<1x256xf32>
    %c89 = arith.constant 89 : index
    %463 = memref.load %arg1[%c89] : memref<98xf32, #tpu.memory_space<smem>>
    %c1_154 = arith.constant 1 : index
    %c162_155 = arith.constant 162 : index
    %464 = vector.load %arg4[%c1_154, %c162_155] : memref<2x443xf32, #tpu.memory_space<vmem>>, vector<1x256xf32>
    %465 = vector.broadcast %463 : f32 to vector<1x256xf32>
    %466 = arith.mulf %465, %464 : vector<1x256xf32>
    %467 = arith.addf %462, %466 : vector<1x256xf32>
    %c96_156 = arith.constant 96 : index
    %468 = memref.load %arg1[%c96_156] : memref<98xf32, #tpu.memory_space<smem>>
    %c1_157 = arith.constant 1 : index
    %c178_158 = arith.constant 178 : index
    %469 = vector.load %arg4[%c1_157, %c178_158] : memref<2x443xf32, #tpu.memory_space<vmem>>, vector<1x256xf32>
    %470 = vector.broadcast %468 : f32 to vector<1x256xf32>
    %471 = arith.mulf %470, %469 : vector<1x256xf32>
    %472 = arith.addf %467, %471 : vector<1x256xf32>
    %c-2_i32 = arith.constant -2 : i32
    %473 = vector.broadcast %c-2_i32 : i32 to vector<1x256xi32>
    %474 = arith.cmpi sge, %26, %473 : vector<1x256xi32>
    %c14_i32 = arith.constant 14 : i32
    %475 = vector.broadcast %c14_i32 : i32 to vector<1x256xi32>
    %476 = arith.cmpi slt, %26, %475 : vector<1x256xi32>
    %477 = arith.andi %474, %476 : vector<1x256xi1>
    %cst_159 = arith.constant 0.000000e+00 : f32
    %478 = vector.broadcast %cst_159 : f32 to vector<1x256xf32>
    %479 = arith.select %477, %472, %478 : vector<1x256xi1>, vector<1x256xf32>
    %480 = arith.addf %403, %479 : vector<1x256xf32>
    %c6 = arith.constant 6 : index
    %481 = memref.load %arg1[%c6] : memref<98xf32, #tpu.memory_space<smem>>
    %c0_160 = arith.constant 0 : index
    %c83 = arith.constant 83 : index
    %482 = vector.load %arg4[%c0_160, %c83] : memref<2x443xf32, #tpu.memory_space<vmem>>, vector<1x256xf32>
    %483 = vector.broadcast %481 : f32 to vector<1x256xf32>
    %484 = arith.mulf %483, %482 : vector<1x256xf32>
    %c13 = arith.constant 13 : index
    %485 = memref.load %arg1[%c13] : memref<98xf32, #tpu.memory_space<smem>>
    %c0_161 = arith.constant 0 : index
    %c99 = arith.constant 99 : index
    %486 = vector.load %arg4[%c0_161, %c99] : memref<2x443xf32, #tpu.memory_space<vmem>>, vector<1x256xf32>
    %487 = vector.broadcast %485 : f32 to vector<1x256xf32>
    %488 = arith.mulf %487, %486 : vector<1x256xf32>
    %489 = arith.addf %484, %488 : vector<1x256xf32>
    %c20 = arith.constant 20 : index
    %490 = memref.load %arg1[%c20] : memref<98xf32, #tpu.memory_space<smem>>
    %c0_162 = arith.constant 0 : index
    %c115 = arith.constant 115 : index
    %491 = vector.load %arg4[%c0_162, %c115] : memref<2x443xf32, #tpu.memory_space<vmem>>, vector<1x256xf32>
    %492 = vector.broadcast %490 : f32 to vector<1x256xf32>
    %493 = arith.mulf %492, %491 : vector<1x256xf32>
    %494 = arith.addf %489, %493 : vector<1x256xf32>
    %c27 = arith.constant 27 : index
    %495 = memref.load %arg1[%c27] : memref<98xf32, #tpu.memory_space<smem>>
    %c0_163 = arith.constant 0 : index
    %c131 = arith.constant 131 : index
    %496 = vector.load %arg4[%c0_163, %c131] : memref<2x443xf32, #tpu.memory_space<vmem>>, vector<1x256xf32>
    %497 = vector.broadcast %495 : f32 to vector<1x256xf32>
    %498 = arith.mulf %497, %496 : vector<1x256xf32>
    %499 = arith.addf %494, %498 : vector<1x256xf32>
    %c34 = arith.constant 34 : index
    %500 = memref.load %arg1[%c34] : memref<98xf32, #tpu.memory_space<smem>>
    %c0_164 = arith.constant 0 : index
    %c147 = arith.constant 147 : index
    %501 = vector.load %arg4[%c0_164, %c147] : memref<2x443xf32, #tpu.memory_space<vmem>>, vector<1x256xf32>
    %502 = vector.broadcast %500 : f32 to vector<1x256xf32>
    %503 = arith.mulf %502, %501 : vector<1x256xf32>
    %504 = arith.addf %499, %503 : vector<1x256xf32>
    %c41 = arith.constant 41 : index
    %505 = memref.load %arg1[%c41] : memref<98xf32, #tpu.memory_space<smem>>
    %c0_165 = arith.constant 0 : index
    %c163 = arith.constant 163 : index
    %506 = vector.load %arg4[%c0_165, %c163] : memref<2x443xf32, #tpu.memory_space<vmem>>, vector<1x256xf32>
    %507 = vector.broadcast %505 : f32 to vector<1x256xf32>
    %508 = arith.mulf %507, %506 : vector<1x256xf32>
    %509 = arith.addf %504, %508 : vector<1x256xf32>
    %c48 = arith.constant 48 : index
    %510 = memref.load %arg1[%c48] : memref<98xf32, #tpu.memory_space<smem>>
    %c0_166 = arith.constant 0 : index
    %c179 = arith.constant 179 : index
    %511 = vector.load %arg4[%c0_166, %c179] : memref<2x443xf32, #tpu.memory_space<vmem>>, vector<1x256xf32>
    %512 = vector.broadcast %510 : f32 to vector<1x256xf32>
    %513 = arith.mulf %512, %511 : vector<1x256xf32>
    %514 = arith.addf %509, %513 : vector<1x256xf32>
    %c55 = arith.constant 55 : index
    %515 = memref.load %arg1[%c55] : memref<98xf32, #tpu.memory_space<smem>>
    %c1_167 = arith.constant 1 : index
    %c83_168 = arith.constant 83 : index
    %516 = vector.load %arg4[%c1_167, %c83_168] : memref<2x443xf32, #tpu.memory_space<vmem>>, vector<1x256xf32>
    %517 = vector.broadcast %515 : f32 to vector<1x256xf32>
    %518 = arith.mulf %517, %516 : vector<1x256xf32>
    %519 = arith.addf %514, %518 : vector<1x256xf32>
    %c62 = arith.constant 62 : index
    %520 = memref.load %arg1[%c62] : memref<98xf32, #tpu.memory_space<smem>>
    %c1_169 = arith.constant 1 : index
    %c99_170 = arith.constant 99 : index
    %521 = vector.load %arg4[%c1_169, %c99_170] : memref<2x443xf32, #tpu.memory_space<vmem>>, vector<1x256xf32>
    %522 = vector.broadcast %520 : f32 to vector<1x256xf32>
    %523 = arith.mulf %522, %521 : vector<1x256xf32>
    %524 = arith.addf %519, %523 : vector<1x256xf32>
    %c69 = arith.constant 69 : index
    %525 = memref.load %arg1[%c69] : memref<98xf32, #tpu.memory_space<smem>>
    %c1_171 = arith.constant 1 : index
    %c115_172 = arith.constant 115 : index
    %526 = vector.load %arg4[%c1_171, %c115_172] : memref<2x443xf32, #tpu.memory_space<vmem>>, vector<1x256xf32>
    %527 = vector.broadcast %525 : f32 to vector<1x256xf32>
    %528 = arith.mulf %527, %526 : vector<1x256xf32>
    %529 = arith.addf %524, %528 : vector<1x256xf32>
    %c76 = arith.constant 76 : index
    %530 = memref.load %arg1[%c76] : memref<98xf32, #tpu.memory_space<smem>>
    %c1_173 = arith.constant 1 : index
    %c131_174 = arith.constant 131 : index
    %531 = vector.load %arg4[%c1_173, %c131_174] : memref<2x443xf32, #tpu.memory_space<vmem>>, vector<1x256xf32>
    %532 = vector.broadcast %530 : f32 to vector<1x256xf32>
    %533 = arith.mulf %532, %531 : vector<1x256xf32>
    %534 = arith.addf %529, %533 : vector<1x256xf32>
    %c83_175 = arith.constant 83 : index
    %535 = memref.load %arg1[%c83_175] : memref<98xf32, #tpu.memory_space<smem>>
    %c1_176 = arith.constant 1 : index
    %c147_177 = arith.constant 147 : index
    %536 = vector.load %arg4[%c1_176, %c147_177] : memref<2x443xf32, #tpu.memory_space<vmem>>, vector<1x256xf32>
    %537 = vector.broadcast %535 : f32 to vector<1x256xf32>
    %538 = arith.mulf %537, %536 : vector<1x256xf32>
    %539 = arith.addf %534, %538 : vector<1x256xf32>
    %c90 = arith.constant 90 : index
    %540 = memref.load %arg1[%c90] : memref<98xf32, #tpu.memory_space<smem>>
    %c1_178 = arith.constant 1 : index
    %c163_179 = arith.constant 163 : index
    %541 = vector.load %arg4[%c1_178, %c163_179] : memref<2x443xf32, #tpu.memory_space<vmem>>, vector<1x256xf32>
    %542 = vector.broadcast %540 : f32 to vector<1x256xf32>
    %543 = arith.mulf %542, %541 : vector<1x256xf32>
    %544 = arith.addf %539, %543 : vector<1x256xf32>
    %c97_180 = arith.constant 97 : index
    %545 = memref.load %arg1[%c97_180] : memref<98xf32, #tpu.memory_space<smem>>
    %c1_181 = arith.constant 1 : index
    %c179_182 = arith.constant 179 : index
    %546 = vector.load %arg4[%c1_181, %c179_182] : memref<2x443xf32, #tpu.memory_space<vmem>>, vector<1x256xf32>
    %547 = vector.broadcast %545 : f32 to vector<1x256xf32>
    %548 = arith.mulf %547, %546 : vector<1x256xf32>
    %549 = arith.addf %544, %548 : vector<1x256xf32>
    %c-3_i32 = arith.constant -3 : i32
    %550 = vector.broadcast %c-3_i32 : i32 to vector<1x256xi32>
    %551 = arith.cmpi sge, %26, %550 : vector<1x256xi32>
    %c13_i32 = arith.constant 13 : i32
    %552 = vector.broadcast %c13_i32 : i32 to vector<1x256xi32>
    %553 = arith.cmpi slt, %26, %552 : vector<1x256xi32>
    %554 = arith.andi %551, %553 : vector<1x256xi1>
    %cst_183 = arith.constant 0.000000e+00 : f32
    %555 = vector.broadcast %cst_183 : f32 to vector<1x256xf32>
    %556 = arith.select %554, %549, %555 : vector<1x256xi1>, vector<1x256xf32>
    %557 = arith.addf %480, %556 : vector<1x256xf32>
    %558 = arith.negf %557 : vector<1x256xf32>
    %559 = math.exp %558 : vector<1x256xf32>
    %cst_184 = arith.constant 1.000000e+00 : f32
    %560 = vector.broadcast %cst_184 : f32 to vector<1x256xf32>
    %561 = arith.addf %560, %559 : vector<1x256xf32>
    %562 = arith.divf %560, %561 : vector<1x256xf32>
    %c0_185 = arith.constant 0 : index
    %c0_186 = arith.constant 0 : index
    %c0_187 = arith.constant 0 : index
    %563 = vector.load %arg2[%c0_185, %c0_186, %c0_187] : memref<1x4x256xf32, #tpu.memory_space<vmem>>, vector<1x4x256xf32>
    %564 = vector.shape_cast %562 : vector<1x256xf32> to vector<1x1x256xf32>
    %565 = vector.broadcast %564 : vector<1x1x256xf32> to vector<1x4x256xf32>
    %566 = arith.mulf %563, %565 : vector<1x4x256xf32>
    %c0_188 = arith.constant 0 : index
    %c0_189 = arith.constant 0 : index
    %c0_190 = arith.constant 0 : index
    %567 = vector.load %arg3[%c0_188, %c0_189, %c0_190] : memref<1x4x256xf32, #tpu.memory_space<vmem>>, vector<1x4x256xf32>
    tpu.vector_store %arg3[%c0_188, %c0_189, %c0_190], %566 {strides = array<i32>} : memref<1x4x256xf32, #tpu.memory_space<vmem>>, vector<1x4x256xf32>,
    return
  }
  func.func @transform_0(%arg0: i32) -> i32 {
    %c0_i32 = arith.constant 0 : i32
    %c0_i32_0 = arith.constant 0 : i32
    return %c0_i32 : i32
  }
  func.func @transform_1(%arg0: i32) -> (i32, i32, i32) {
    %c0_i32 = arith.constant 0 : i32
    %c0_i32_0 = arith.constant 0 : i32
    %c0_i32_1 = arith.constant 0 : i32
    return %arg0, %c0_i32, %c0_i32_0 : i32, i32, i32
  }
  func.func @transform_2(%arg0: i32) -> (i32, i32, i32) {
    %c0_i32 = arith.constant 0 : i32
    %c0_i32_0 = arith.constant 0 : i32
    %c0_i32_1 = arith.constant 0 : i32
    return %arg0, %c0_i32, %c0_i32_0 : i32, i32, i32
  }
}

</mosaic_0001>

<bundles_post_ra>
// kernel: spatial_attention.1
= control target key start
LH: loop header
LB: loop body
LE: loop exit
PB: predicated region body
PF: predicated region fallthrough
CT: control target
= control target key end

     0   :  { %7 = vsyncpa [#allocation4], 0  ;;  %s1709_s9 = smov 0   ;;  %s2307_s0 = inlined_call_operand.vmem [shape: f32[98], index: 0, kind: input, shape index: {}]   ;;  %s2308_s1 = inlined_call_operand.vmem [shape: f32[2,4,256], index: 1, kind: input, shape index: {}]   ;;  %s2309_s2 = inlined_call_operand.vmem [shape: f32[2,4,256], index: 2, kind: output, shape index: {}]  }
   0x1 LB: > { %s1715_s10 = sadd.s32 4294967295, %s1677_s9   ;;  %p1497_p0 = scmp.ge.s32.totalorder %s1677_s9, 1  ;;  %s1677_s9 = sphi %s1709_s9, %s13_s9  }
   0x2   : > { %p91_p1 = scmp.lt.s32.totalorder %s1677_s9, 3  ;;  %s104_s13 = sshll.u32 %s2307_s0, 4  ;;  %s105_s13 = int_to_ptr.vmem [resolvable:$true] %s104_s13 }
   0x3   : > { %p1617_p3 = scmp.eq.s32.totalorder %s1715_s10, 0  ;;  %s1652_s15 = scalar_lea.vmem %s105_s13, 16 }
   0x4   : > { %p1722_p2 = pnand %p1497_p0, %p91_p1  ;;  %p1653_p6 = scmp.ne.s32.totalorder %s105_s13, %s1652_s15 }
   0x5   : > { %p1660_p10 = scmp.lt.s32.totalorder %s105_s13, %s105_s13  ;;  %p1661_p11 = scmp.lt.s32.totalorder %s1652_s15, %s1652_s15 }
   0x6   : > { %p1613_p4 = pneg %p1722_p2 }
   0x7   : > { %p1662_p12 = por %p1661_p11, %p1660_p10 }
   0x8   : > { %p1614_p5 = pnand %p1617_p3, %p1613_p4 }
   0xa   : > { %p1654_p7 = pneg %p1614_p5 }
   0xc   : > { %p1655_p8 = pnand %p1654_p7, %p1653_p6 }
   0xe   : > { %p1656_p9 = pneg %p1655_p8 }
  0x10   : > { %p1663_p13 = pnand %p1662_p12, %p1656_p9 }
  0x12   : > { %1666 = shalt.err (!%p1663_p13)
}
  0x13   : > { %s1679_s16 = smov [#allocation3]   ;;  %125 = sbr.rel (%p1722_p2) target bundleno = 513 (0x201), region = 28 }
  0x14   : > { %1616 = dma.vmem_to_smem (!%p1614_p5), %s105_s13, 16, %s1679_s16, [#allocation4]  }
  0x1a   : > { %1672 = dma.done.wait (%p1617_p3), [#allocation4], 16  }
  0x1b   : > { %1674 = vsyncadd (%p1617_p3), [#allocation4], 4294967280 }
  0x1c   : > { %131 = sfence }
  0x1d   : > { %p148_p0 = scmp.lt.s32.totalorder %s1715_s10, 1  ;;  %vm193_vm0 = vcmask 1041408   ;;  %vm194_vm1 = vcmask 1043458   ;;  %vm196_vm2 = vcmask 1045508   ;;  %vm198_vm4 = vcmask 482310   ;;  %s1508_s21 = sld [smem:[#allocation3 + $0x15]] }
  0x1e   : > { %vm195_vm3 = vmor %vm194_vm1, %vm193_vm0  ;;  %vm162_vm7 = vcmask 1043456   ;;  %v1680_v0 = vmov 0.0   ;;  %v207_v12 = vlaneseq  ;;  %v1681_v16 = vmov 1966171168   ;;  %s1506_s22 = sld [smem:[#allocation3 + $0x7]]  ;;  %s1509_s23 = sld [smem:[#allocation3 + $0x1c]] }
  0x1f   : > { %s2312_s10 = smov (!%p148_p0, %s1715_s10), 1  ;;  %vm197_vm5 = vmor %vm196_vm2, %vm195_vm3  ;;  %v205_v17 = vunpack.c.l.s4 %v1681_v16  ;;  %s1507_s24 = sld [smem:[#allocation3 + $0xe]]  ;;  %vm283_vm9 = vcmask 916480   ;;  %vm294_vm10 = vcmask 785408   ;;  %vm305_vm11 = vcmask 654336  }
  0x20   : > { %vm199_vm6 = vmor %vm198_vm4, %vm197_vm5  ;;  %s1607_s17 = sshll.u32 %s2312_s10, 3  ;;  %v1751_v27 = vshrl.u32 %v207_v12, 7  ;;  %vm221_vm8 = vcmp.lt.s32.totalorder %v207_v12, 256  ;;  %s1511_s25 = sld [smem:[#allocation3 + $0x2a]]  ;;  %vm317_vm12 = vcmask 523264   ;;  %vm328_vm13 = vcmask 392192  }
  0x21   : > { %200 = vst.msk [vmem:[#allocation2] sm:$0xff] %vm199_vm6, %v1680_v0  ;;  %s1747_s20 = scalar_lea.vmem %s2308_s1, %s1607_s17  ;;  %v206_v26 = vunpack.c.0.s8 %v205_v17  ;;  %s1510_s26 = sld [smem:[#allocation3 + $0x23]]  ;;  %vm339_vm14 = vcmask 261120   ;;  %vm594_vm15 = vcmask 408576   ;;  %vm435_vm0 = vcmask 416768  }
  0x22   : > { %v158_v1 = vld [vmem:[%s1747_s20] sm:$0xff]  ;;  %s1755_s27 = sld [smem:[#allocation3 + $0x8]]  ;;  %s1757_s28 = sld [smem:[#allocation3 + $0xf]]  ;;  %vm755_vm1 = vcmask 400384  }
  0x23   : > { %v160_v2 = vcombine.high %v158_v1, %v158_v1  ;;  %v163_v3 = vsel %vm162_vm7, %v158_v1, -inf  ;;  %v177_v4 = vsel %vm162_vm7, %v158_v1, 0.0  ;;  %v209_v35 = vsub.s32 %v206_v26, %v1751_v27  ;;  %s1682_s29 = smov 80   ;;  %s1683_s30 = smov 112  }
  0x24   : > { %v164_v5 = vrot.slane %v163_v3, 4  ;;  %v178_v6 = vrot.slane %v177_v4, 4  ;;  %v299_v45 = vstv %s1508_s21  ;;  %v277_v46 = vstv %s1506_s22  ;;  %s1534_s3 = sld [smem:[#allocation3 + $0x9]]  ;;  %s1522_s4 = sld [smem:[#allocation3 + $0x16]] }
  0x25   : > { %v170_v7 = vsel %vm162_vm7, %v160_v2, -inf  ;;  %v184_v8 = vsel %vm162_vm7, %v160_v2, 0.0  ;;  %v311_v49 = vstv %s1509_s23  ;;  %v288_v50 = vstv %s1507_s24  ;;  %s1684_s5 = smov 64   ;;  %s1685_s6 = smov 96  }
  0x26   : > { %v165_v9 = vmax.f32 %v163_v3, %v164_v5  ;;  %v171_v10 = vrot.slane %v170_v7, 4  ;;  %v179_v11 = vadd.f32 %v178_v6, %v177_v4  ;;  %v185_v13 = vrot.slane %v184_v8, 4  ;;  %s1535_s7 = sld [smem:[#allocation3 + $0x10]]  ;;  %s1548_s8 = sld [smem:[#allocation3 + $0xa]] }
  0x27   : > { %v333_v55 = vstv %s1511_s25  ;;  %v322_v56 = vstv %s1510_s26  ;;  %s1686_s11 = smov 32   ;;  %s1687_s12 = smov 48  }
  0x28   : > { %v166_v14 = vrot.slane %v165_v9, 2  ;;  %v172_v15 = vmax.f32 %v170_v7, %v171_v10  ;;  %v180_v18 = vrot.slane %v179_v11, 2  ;;  %v186_v19 = vadd.f32 %v185_v13, %v184_v8  ;;  %s1523_s13 = sld [smem:[#allocation3 + $0x1d]]  ;;  %s1536_s14 = sld [smem:[#allocation3 + $0x17]] }
  0x29   : > { %v446_v59 = vstv %s1755_s27  ;;  %v456_v60 = vstv %s1757_s28  ;;  %s1562_s15 = sld [smem:[#allocation3 + $0xb]]  ;;  %s1549_s16 = sld [smem:[#allocation3 + $0x11]] }
  0x2a   : > { %v167_v20 = vmax.f32 %v165_v9, %v166_v14  ;;  %v173_v21 = vrot.slane %v172_v15, 2  ;;  %v181_v22 = vadd.f32 %v180_v18, %v179_v11  ;;  %v187_v23 = vrot.slane %v186_v19, 2  ;;  %s1524_s18 = sld [smem:[#allocation3 + $0x24]]  ;;  %s1537_s19 = sld [smem:[#allocation3 + $0x1e]] }
  0x2b   : > { %v607_v63 = vstv %s1534_s3  ;;  %v466_v0 = vstv %s1522_s4  ;;  %s1563_s21 = sld [smem:[#allocation3 + $0x12]]  ;;  %s1513_s22 = sld [smem:[#allocation3 + $0x38]] }
  0x2c   : > { %v168_v24 = vrot.slane %v167_v20, 1  ;;  %v174_v25 = vmax.f32 %v172_v15, %v173_v21  ;;  %v182_v28 = vrot.slane %v181_v22, 1  ;;  %v188_v29 = vadd.f32 %v187_v23, %v186_v19  ;;  %s1514_s23 = sld [smem:[#allocation3 + $0x3f]]  ;;  %s1515_s24 = sld [smem:[#allocation3 + $0x46]] }
  0x2d   : > { %v617_v3 = vstv %s1535_s7  ;;  %v768_v4 = vstv %s1548_s8  ;;  %s1550_s25 = sld [smem:[#allocation3 + $0x18]]  ;;  %s1576_s26 = sld [smem:[#allocation3 + $0xc]] }
  0x2e   : > { %v169_v30 = vmax.f32 %v167_v20, %v168_v24  ;;  %v175_v31 = vrot.slane %v174_v25, 1  ;;  %v183_v32 = vadd.f32 %v182_v28, %v181_v22  ;;  %v189_v33 = vrot.slane %v188_v29, 1  ;;  %s1538_s27 = sld [smem:[#allocation3 + $0x25]]  ;;  %s1525_s28 = sld [smem:[#allocation3 + $0x2b]] }
  0x2f   : > { %v476_v7 = vstv %s1523_s13  ;;  %v627_v8 = vstv %s1536_s14  ;;  %v922_v11 = vstv %s1562_s15  ;;  %v778_v13 = vstv %s1549_s16  ;;  %s1577_s3 = sld [smem:[#allocation3 + $0x13]]  ;;  %s1564_s4 = sld [smem:[#allocation3 + $0x19]] }
  0x30   : > { %v176_v34 = vmax.f32 %v174_v25, %v175_v31  ;;  %v190_v36 = vadd.f32 %v189_v33, %v188_v29  ;;  %v191_v37 = vmul.f32 0.25, %v183_v32  ;;  %v486_v16 = vstv %s1524_s18  ;;  %s1551_s7 = sld [smem:[#allocation3 + $0x1f]]  ;;  %s1590_s8 = sld [smem:[#allocation3 + $0xd]] }
  0x31   : > { %v637_v17 = vstv %s1537_s19  ;;  %v932_v20 = vstv %s1563_s21  ;;  %v350_v22 = vstv %s1513_s22  ;;  %s1565_s13 = sld [smem:[#allocation3 + $0x20]]  ;;  %s1539_s14 = sld [smem:[#allocation3 + $0x2c]] }
  0x32   : > { %v203_v38 = vcombine.low %v169_v30, %v176_v34  ;;  %v192_v39 = vmul.f32 0.25, %v190_v36  ;;  %v360_v25 = vstv %s1514_s23  ;;  %v370_v26 = vstv %s1515_s24  ;;  %s1591_s15 = sld [smem:[#allocation3 + $0x14]]  ;;  %s1578_s16 = sld [smem:[#allocation3 + $0x1a]] }
  0x33   : > { %v789_v31 = vstv %s1550_s25  ;;  %v1083_v32 = vstv %s1576_s26  ;;  %s1527_s18 = sld [smem:[#allocation3 + $0x39]]  ;;  %s1552_s19 = sld [smem:[#allocation3 + $0x26]] }
  0x34   : > { %v210_v40 = vrot.slane %v203_v38, %v209_v35  ;;  %v227_v41 = vcombine.low %v191_v37, %v192_v39  ;;  %v496_v36 = vstv %s1525_s28  ;;  %s1579_s21 = sld [smem:[#allocation3 + $0x21]]  ;;  %s1566_s22 = sld [smem:[#allocation3 + $0x27]] }
  0x35   : > { %v1093_v39 = vstv %s1577_s3  ;;  %s1553_s23 = sld [smem:[#allocation3 + $0x2d]]  ;;  %s1592_s24 = sld [smem:[#allocation3 + $0x1b]] }
  0x36   : > { %v217_v42 = vrot.slane %v210_v40, %v209_v35  ;;  %v234_v43 = vrot.slane %v227_v41, %v209_v35  ;;  %v942_v40 = vstv %s1564_s4  ;;  %s1541_s25 = sld [smem:[#allocation3 + $0x3a]]  ;;  %s1528_s26 = sld [smem:[#allocation3 + $0x40]] }
  0x37   : > { %s1567_s28 = sld [smem:[#allocation3 + $0x2e]]  ;;  %s1529_s3 = sld [smem:[#allocation3 + $0x47]] }
  0x38   : > { %224 = vst.msk [vmem:[#allocation2 + $0x2] ss:$2 sm:$0x3] %vm221_vm8, %v217_v42  ;;  %v241_v44 = vrot.slane %v234_v43, %v209_v35  ;;  %v647_v35 = vstv %s1538_s27  ;;  %v799_v43 = vstv %s1551_s7  ;;  %s1580_s27 = sld [smem:[#allocation3 + $0x28]]  ;;  %s1593_s4 = sld [smem:[#allocation3 + $0x22]] }
  0x39   : > { %s1581_s7 = sld [smem:[#allocation3 + $0x2f]] }
  0x3a   : > { %244 = vst.msk [vmem:[#allocation2 + $0x3] ss:$2 sm:$0x3] %vm221_vm8, %v241_v44  ;;  %v1244_v44 = vstv %s1590_s8  ;;  %s1542_s8 = sld [smem:[#allocation3 + $0x41]]  ;;  %vm1070_vm8 = vcmask 384000  }
  0x3f   : > { %v1759_v47 = vld [vmem:[#allocation2] ss:$2 sm:$0x7] }
  0x40   : > { %v1761_v48 = vld [vmem:[#allocation2 + $0x2] ss:$2 sm:$0x7]  ;;  %v300_v51 = vmul.f32 %v299_v45, %v1759_v47  ;;  %v278_v52 = vmul.f32 %v277_v46, %v1759_v47  ;;  %v289_v54 = vmul.f32 %v288_v50, %v1759_v47  ;;  %v447_v61 = vmul.f32 %v446_v59, %v1759_v47 }
  0x41   : > { %v312_v53 = vmul.f32 %v311_v49, %v1761_v48  ;;  %v334_v57 = vmul.f32 %v333_v55, %v1761_v48  ;;  %v323_v58 = vmul.f32 %v322_v56, %v1761_v48  ;;  %v457_v62 = vmul.f32 %v456_v60, %v1759_v47  ;;  %v1799_v21 = vld [vmem:[#allocation2 + $0x1] ss:$2 sm:$0x7]  ;;  %v788_v30 = vld [vmem:[#allocation2 + $0x2] ss:$2 sm:$0x3] }
  0x42   : > { %302 = vrot.lane.b32.xlu1 %v300_v51, %s1682_s29  ;;  %280 = vrot.lane.b32.xlu0 %v278_v52, %s1683_s30  ;;  %v608_v1 = vmul.f32 %v607_v63, %v1759_v47  ;;  %v467_v2 = vmul.f32 %v466_v0, %v1759_v47  ;;  %v618_v5 = vmul.f32 %v617_v3, %v1759_v47  ;;  %v952_v49 = vstv %s1565_s13  ;;  %s1555_s13 = sld [smem:[#allocation3 + $0x3b]] }
  0x43   : > { %v769_v6 = vmul.f32 %v768_v4, %v1759_v47  ;;  %v477_v9 = vmul.f32 %v476_v7, %v1761_v48  ;;  %v628_v10 = vmul.f32 %v627_v8, %v1759_v47  ;;  %v923_v14 = vmul.f32 %v922_v11, %v1759_v47 }
  0x44   : > { %v779_v15 = vmul.f32 %v778_v13, %v1759_v47  ;;  %v487_v18 = vmul.f32 %v486_v16, %v1761_v48  ;;  %v638_v19 = vmul.f32 %v637_v17, %v1761_v48  ;;  %v933_v23 = vmul.f32 %v932_v20, %v1759_v47 }
  0x45   : > { %v351_v24 = vmul.f32 %v350_v22, %v1799_v21  ;;  %v361_v28 = vmul.f32 %v360_v25, %v1799_v21  ;;  %v371_v29 = vmul.f32 %v370_v26, %v1799_v21  ;;  %v790_v33 = vmul.f32 %v789_v31, %v788_v30 }
  0x46   : > { %314 = vrot.lane.b32.xlu1 %v312_v53, %s1684_s5  ;;  %291 = vrot.lane.b32.xlu0 %v289_v54, %s1685_s6  ;;  %v1084_v34 = vmul.f32 %v1083_v32, %v1759_v47  ;;  %v648_v37 = vmul.f32 %v647_v35, %v1761_v48  ;;  %v497_v38 = vmul.f32 %v496_v36, %v1761_v48  ;;  %v657_v50 = vstv %s1539_s14  ;;  %s1594_s14 = sld [smem:[#allocation3 + $0x29]] }
  0x47   : > { %v1094_v41 = vmul.f32 %v1093_v39, %v1759_v47  ;;  %v943_v42 = vmul.f32 %v942_v40, %v1761_v48  ;;  %v800_v45 = vmul.f32 %v799_v43, %v1761_v48  ;;  %v1245_v46 = vmul.f32 %v1244_v44, %v1759_v47 }
  0x48   : > { %v953_v51 = vmul.f32 %v952_v49, %v1761_v48  ;;  %v658_v52 = vmul.f32 %v657_v50, %v1761_v48  ;;  %v1254_v53 = vstv %s1591_s15  ;;  %v1103_v54 = vstv %s1578_s16  ;;  %s1530_s15 = sld [smem:[#allocation3 + $0x4e]]  ;;  %s1516_s16 = sld [smem:[#allocation3 + $0x4d]]  ;;  %v853_v50 = vld [vmem:[#allocation2 + $0x3] ss:$2 sm:$0x3] }
  0x49   : > { %v1255_v55 = vmul.f32 %v1254_v53, %v1759_v47  ;;  %v1104_v56 = vmul.f32 %v1103_v54, %v1761_v48 }
  0x4a   : > { %336 = vrot.lane.b32.xlu1 %v334_v57, %s1686_s11  ;;  %325 = vrot.lane.b32.xlu0 %v323_v58, %s1687_s12  ;;  %v510_v57 = vstv %s1527_s18  ;;  %v809_v58 = vstv %s1552_s19  ;;  %s1569_s18 = sld [smem:[#allocation3 + $0x3c]]  ;;  %s1543_s19 = sld [smem:[#allocation3 + $0x48]] }
  0x4b   : > { %v511_v59 = vmul.f32 %v510_v57, %v1799_v21  ;;  %v810_v60 = vmul.f32 %v809_v58, %v1761_v48 }
  0x4e   : > { %449 = vrot.lane.b32.xlu1 %v447_v61, %s1683_s30  ;;  %459 = vrot.lane.b32.xlu0 %v457_v62, %s1685_s6  ;;  %v1113_v61 = vstv %s1579_s21  ;;  %v962_v62 = vstv %s1566_s22  ;;  %s1556_s21 = sld [smem:[#allocation3 + $0x42]]  ;;  %s1595_s22 = sld [smem:[#allocation3 + $0x30]] }
  0x4f   : > { %v1114_v63 = vmul.f32 %v1113_v61, %v1761_v48  ;;  %v963_v0 = vmul.f32 %v962_v62, %v1761_v48  ;;  %v381_v30 = vstv %s1516_s16  ;;  %s1901_s16 = sld [smem:[#allocation3 + $0x44]] }
  0x52   : > { %610 = vrot.lane.b32.xlu1 %v608_v1, %s1683_s30  ;;  %469 = vrot.lane.b32.xlu0 %v467_v2, %s1682_s29  ;;  %v819_v1 = vstv %s1553_s23  ;;  %v1264_v2 = vstv %s1592_s24  ;;  %s1531_s23 = sld [smem:[#allocation3 + $0x55]]  ;;  %s1517_s24 = sld [smem:[#allocation3 + $0x54]] }
  0x53   : > { %v820_v3 = vmul.f32 %v819_v1, %v1761_v48  ;;  %v1265_v4 = vmul.f32 %v1264_v2, %v1761_v48 }
  0x56   : > { %620 = vrot.lane.b32.xlu1 %v618_v5, %s1685_s6  ;;  %771 = vrot.lane.b32.xlu0 %v769_v6, %s1683_s30  ;;  %v671_v5 = vstv %s1541_s25  ;;  %v520_v6 = vstv %s1528_s26  ;;  %s1570_s25 = sld [smem:[#allocation3 + $0x43]]  ;;  %s1544_s26 = sld [smem:[#allocation3 + $0x4f]] }
  0x57   : > { %v672_v7 = vmul.f32 %v671_v5, %v1799_v21  ;;  %v521_v8 = vmul.f32 %v520_v6, %v1799_v21 }
  0x5a   : > { %479 = vrot.lane.b32.xlu1 %v477_v9, %s1684_s5  ;;  %630 = vrot.lane.b32.xlu0 %v628_v10, %s1682_s29  ;;  %v1123_v9 = vstv %s1580_s27  ;;  %v972_v10 = vstv %s1567_s28  ;;  %s1557_s27 = sld [smem:[#allocation3 + $0x49]]  ;;  %s1583_s28 = sld [smem:[#allocation3 + $0x3d]] }
  0x5b   : > { %v1124_v11 = vmul.f32 %v1123_v9, %v1761_v48  ;;  %v973_v13 = vmul.f32 %v972_v10, %v1761_v48  ;;  %v1157_v10 = vstv %s1901_s16  ;;  %s2035_s16 = sld [smem:[#allocation3 + $0x5a]] }
  0x5e   : > { %925 = vrot.lane.b32.xlu1 %v923_v14, %s1683_s30  ;;  %781 = vrot.lane.b32.xlu0 %v779_v15, %s1685_s6  ;;  %v530_v14 = vstv %s1529_s3  ;;  %v1274_v15 = vstv %s1593_s4  ;;  %s1532_s3 = sld [smem:[#allocation3 + $0x5c]]  ;;  %s1518_s4 = sld [smem:[#allocation3 + $0x5b]] }
  0x5f   : > { %v531_v16 = vmul.f32 %v530_v14, %v1799_v21  ;;  %v1275_v17 = vmul.f32 %v1274_v15, %v1761_v48 }
  0x62   : > { %489 = vrot.lane.b32.xlu1 %v487_v18, %s1687_s12  ;;  %640 = vrot.lane.b32.xlu0 %v638_v19, %s1684_s5  ;;  %v1133_v18 = vstv %s1581_s7  ;;  %v681_v19 = vstv %s1542_s8  ;;  %s1886_s7 = sld [smem:[#allocation3 + $0x4a]]  ;;  %s1888_s8 = sld [smem:[#allocation3 + $0x56]] }
  0x63   : > { %v1134_v20 = vmul.f32 %v1133_v18, %v1761_v48  ;;  %v682_v22 = vmul.f32 %v681_v19, %v1799_v21 }
  0x64   : > { %v560_v57 = vstv %s1532_s3  ;;  %v401_v58 = vstv %s1518_s4  ;;  %s1967_s3 = sld [smem:[#allocation3 + $0x58]]  ;;  %s1983_s4 = sld [smem:[#allocation3 + $0x5e]] }
  0x66   : > { %935 = vrot.lane.b32.xlu1 %v933_v23, %s1685_s6  ;;  %353 = vrot.lane.b32.xlu0 %v351_v24, %s1683_s30  ;;  %v833_v23 = vstv %s1555_s13  ;;  %v1284_v24 = vstv %s1594_s14  ;;  %s1892_s13 = sld [smem:[#allocation3]]  ;;  %s1894_s14 = sld [smem:[#allocation3 + $0x1]] }
  0x67   : > { %v834_v25 = vmul.f32 %v833_v23, %v1799_v21  ;;  %v1285_v26 = vmul.f32 %v1284_v24, %v1761_v48  ;;  %v1158_v23 = vmul.f32 %v1157_v10, %v1799_v21 }
  0x6a   : > { %363 = vrot.lane.b32.xlu1 %v361_v28, %s1685_s6  ;;  %373 = vrot.lane.b32.xlu0 %v371_v29, %s1682_s29  ;;  %v1864_v28 = vld [vmem:[#allocation2 + $0x3] ss:$2 sm:$0x7]  ;;  %v540_v29 = vstv %s1530_s15  ;;  %s1899_s15 = sld [smem:[#allocation3 + $0x3e]] }
  0x6b   : > { %v541_v31 = vmul.f32 %v540_v29, %v1864_v28  ;;  %v382_v32 = vmul.f32 %v381_v30, %v1864_v28  ;;  %v561_v61 = vmul.f32 %v560_v57, %v1864_v28  ;;  %v402_v62 = vmul.f32 %v401_v58, %v1864_v28 }
  0x6c   : > { %v443_v5 = vstv %s1894_s14  ;;  %s2016_s14 = sld [smem:[#allocation3 + $0x60]] }
  0x6e   : > { %792 = vrot.lane.b32.xlu1 %v790_v33, %s1682_s29  ;;  %1086 = vrot.lane.b32.xlu0 %v1084_v34, %s1683_s30  ;;  %v986_v33 = vstv %s1569_s18  ;;  %v691_v34 = vstv %s1543_s19  ;;  %s1905_s18 = sld [smem:[#allocation3 + $0x2]]  ;;  %s1907_s19 = sld [smem:[#allocation3 + $0x5d]] }
  0x6f   : > { %v987_v35 = vmul.f32 %v986_v33, %v1799_v21  ;;  %v692_v36 = vmul.f32 %v691_v34, %v1799_v21 }
  0x70   : > { %v1308_v9 = vstv %s1899_s15  ;;  %s2018_s15 = sld [smem:[#allocation3 + $0x53]] }
  0x72   : > { %650 = vrot.lane.b32.xlu1 %v648_v37, %s1687_s12  ;;  %499 = vrot.lane.b32.xlu0 %v497_v38, %s1686_s11  ;;  %v843_v37 = vstv %s1556_s21  ;;  %v1294_v38 = vstv %s1595_s22  ;;  %s1915_s21 = sld [smem:[#allocation3 + $0x50]]  ;;  %s1921_s22 = sld [smem:[#allocation3 + $0x3]] }
  0x73   : > { %v844_v39 = vmul.f32 %v843_v37, %v1799_v21  ;;  %v1295_v40 = vmul.f32 %v1294_v38, %v1761_v48 }
  0x76   : > { %1096 = vrot.lane.b32.xlu1 %v1094_v41, %s1685_s6  ;;  %945 = vrot.lane.b32.xlu0 %v943_v42, %s1682_s29  ;;  %v550_v41 = vstv %s1531_s23  ;;  %v391_v42 = vstv %s1517_s24  ;;  %s1931_s23 = sld [smem:[#allocation3 + $0x4b]]  ;;  %s1933_s24 = sld [smem:[#allocation3 + $0x51]] }
  0x77   : > { %v551_v43 = vmul.f32 %v550_v41, %v1864_v28  ;;  %v392_v44 = vmul.f32 %v391_v42, %v1864_v28 }
  0x78   : > { %v864_v29 = vstv %s1915_s21  ;;  %v765_v34 = vstv %s1921_s22  ;;  %s2151_s21 = sld [smem:[#allocation3 + $0x35]]  ;;  %s2156_s22 = sld [smem:[#allocation3 + $0x36]] }
  0x79   : > { %v865_v42 = vmul.f32 %v864_v29, %v1864_v28 }
  0x7a   : > { %802 = vrot.lane.b32.xlu1 %v800_v45, %s1684_s5  ;;  %1247 = vrot.lane.b32.xlu0 %v1245_v46, %s1683_s30  ;;  %v996_v45 = vstv %s1570_s25  ;;  %v701_v46 = vstv %s1544_s26  ;;  %s1948_s25 = sld [smem:[#allocation3 + $0x57]]  ;;  %s1950_s26 = sld [smem:[#allocation3 + $0x45]] }
  0x7b   : > { %v997_v48 = vmul.f32 %v996_v45, %v1799_v21  ;;  %v702_v49 = vmul.f32 %v701_v46, %v1864_v28 }
  0x7c   : > { %v1167_v45 = vstv %s1931_s23  ;;  %v1016_v46 = vstv %s1933_s24  ;;  %s1688_s23 = smov 51   ;;  %s2166_s24 = sld [smem:[#allocation3 + $0x37]] }
  0x7e   : > { %955 = vrot.lane.b32.xlu1 %v953_v51, %s1684_s5  ;;  %660 = vrot.lane.b32.xlu0 %v658_v52, %s1686_s11  ;;  %v854_v51 = vstv %s1557_s27  ;;  %v1147_v52 = vstv %s1583_s28  ;;  %s1954_s27 = sld [smem:[#allocation3 + $0x4]]  ;;  %s1965_s28 = sld [smem:[#allocation3 + $0x52]] }
  0x82   : > { %1257 = vrot.lane.b32.xlu1 %v1255_v55, %s1685_s6  ;;  %1106 = vrot.lane.b32.xlu0 %v1104_v56, %s1682_s29  ;;  %v855_v55 = vmul.f32 %v854_v51, %v853_v50  ;;  %v1148_v56 = vmul.f32 %v1147_v52, %v1799_v21  ;;  %v766_v51 = vmul.f32 %v765_v34, %v1759_v47 }
  0x86   : > { %513 = vrot.lane.b32.xlu1 %v511_v59, %s1683_s30  ;;  %812 = vrot.lane.b32.xlu0 %v810_v60, %s1687_s12 }
  0x8a   : > { %1116 = vrot.lane.b32.xlu1 %v1114_v63, %s1684_s5  ;;  %965 = vrot.lane.b32.xlu0 %v963_v0, %s1687_s12  ;;  %v1006_v63 = vstv %s1886_s7  ;;  %v711_v0 = vstv %s1888_s8  ;;  %s1985_s7 = sld [smem:[#allocation3 + $0x4c]]  ;;  %s1999_s8 = sld [smem:[#allocation3 + $0x59]] }
  0x8b   : > { %v1007_v6 = vmul.f32 %v1006_v63, %v1864_v28  ;;  %v874_v63 = vstv %s1948_s25  ;;  %s1689_s25 = smov 50  }
  0x8e   : > { %822 = vrot.lane.b32.xlu1 %v820_v3, %s1686_s11  ;;  %1267 = vrot.lane.b32.xlu0 %v1265_v4, %s1682_s29  ;;  %v274_v3 = vstv %s1892_s13  ;;  %s2001_s13 = sld [smem:[#allocation3 + $0x5f]] }
  0x92   : > { %674 = vrot.lane.b32.xlu1 %v672_v7, %s1683_s30  ;;  %523 = vrot.lane.b32.xlu0 %v521_v8, %s1685_s6  ;;  %v712_v7 = vmul.f32 %v711_v0, %v1864_v28  ;;  %v1318_v0 = vstv %s1950_s26  ;;  %s1690_s26 = smov 49  }
  0x96   : > { %1126 = vrot.lane.b32.xlu1 %v1124_v11, %s1687_s12  ;;  %975 = vrot.lane.b32.xlu0 %v973_v13, %s1686_s11  ;;  %v275_v11 = vmul.f32 %v274_v3, %v1759_v47  ;;  %v444_v13 = vmul.f32 %v443_v5, %v1759_v47 }
  0x9a   : > { %533 = vrot.lane.b32.xlu1 %v531_v16, %s1682_s29  ;;  %1277 = vrot.lane.b32.xlu0 %v1275_v17, %s1684_s5  ;;  %v604_v16 = vstv %s1905_s18  ;;  %s2037_s18 = sld [smem:[#allocation3 + $0x61]] }
  0x9e   : > { %1136 = vrot.lane.b32.xlu1 %v1134_v20, %s1686_s11  ;;  %684 = vrot.lane.b32.xlu0 %v682_v22, %s1685_s6  ;;  %v721_v20 = vstv %s1907_s19  ;;  %v1309_v22 = vmul.f32 %v1308_v9, %v1799_v21  ;;  %s2146_s19 = sld [smem:[#allocation3 + $0x34]] }
  0xa2   : > { %836 = vrot.lane.b32.xlu1 %v834_v25, %s1683_s30  ;;  %1287 = vrot.lane.b32.xlu0 %v1285_v26, %s1687_s12  ;;  %v605_v26 = vmul.f32 %v604_v16, %v1759_v47 }
  0xa6   : > { %543 = vrot.lane.b32.xlu1 %v541_v31, %s1684_s5  ;;  %384 = vrot.lane.b32.xlu0 %v382_v32, %s1684_s5 }
  0xaa   : > { %989 = vrot.lane.b32.xlu1 %v987_v35, %s1683_s30  ;;  %694 = vrot.lane.b32.xlu0 %v692_v36, %s1682_s29  ;;  %v722_v35 = vmul.f32 %v721_v20, %v1864_v28 }
  0xae   : > { %846 = vrot.lane.b32.xlu1 %v844_v39, %s1685_s6  ;;  %1297 = vrot.lane.b32.xlu0 %v1295_v40, %s1686_s11 }
  0xb2   : > { %553 = vrot.lane.b32.xlu1 %v551_v43, %s1687_s12  ;;  %394 = vrot.lane.b32.xlu0 %v392_v44, %s1687_s12 }
  0xb4   : > { %v1890_v53 = vpop.permute.xlu1 %302  ;;  %v281_v54 = vpop.permute.xlu0 %280 }
  0xb5   : > { %v282_v4 = vrot.slane %v281_v54, 1  ;;  %v304_v36 = vrot.slane %v1890_v53, 1 }
  0xb6   : > { %999 = vrot.lane.b32.xlu1 %v997_v48, %s1685_s6  ;;  %704 = vrot.lane.b32.xlu0 %v702_v49, %s1684_s5 }
  0xb7   : > { %v284_v17 = vsel %vm283_vm9, %v281_v54, %v282_v4  ;;  %v306_v54 = vsel %vm305_vm11, %v1890_v53, %v304_v36 }
  0xb8   : > { %v1903_v59 = vpop.permute.xlu1 %314  ;;  %v292_v60 = vpop.permute.xlu0 %291  ;;  %v286_v30 = vadd.f32 %v284_v17, %v275_v11 }
  0xb9   : > { %v293_v8 = vrot.slane %v292_v60, 1 }
  0xba   : > { %857 = vrot.lane.b32.xlu1 %v855_v55, %s1682_s29  ;;  %1150 = vrot.lane.b32.xlu0 %v1148_v56, %s1683_s30  ;;  %v316_v55 = vrot.slane %v1903_v59, 7 }
  0xbb   : > { %v295_v24 = vsel %vm294_vm10, %v292_v60, %v293_v8  ;;  %v1168_v60 = vmul.f32 %v1167_v45, %v1864_v28 }
  0xbc   : > { %v1917_v1 = vpop.permute.xlu1 %336  ;;  %v1919_v2 = vpop.permute.xlu0 %325  ;;  %v297_v40 = vadd.f32 %v295_v24, %v286_v30  ;;  %v318_v8 = vsel %vm317_vm12, %v316_v55, %v1903_v59  ;;  %v1026_v59 = vstv %s1967_s3 }
  0xbd   : > { %v327_v9 = vrot.slane %v1919_v2, 7 }
  0xbe   : > { %563 = vrot.lane.b32.xlu1 %v561_v61, %s1686_s11  ;;  %404 = vrot.lane.b32.xlu0 %v402_v62, %s1686_s11  ;;  %v308_v58 = vadd.f32 %v306_v54, %v297_v40  ;;  %v1017_v61 = vmul.f32 %v1016_v46, %v1864_v28 }
  0xc0   : > { %v450_v14 = vpop.permute.xlu1 %449  ;;  %v460_v15 = vpop.permute.xlu0 %459 }
  0xc1   : > { %v451_v18 = vrot.slane %v450_v14, 1  ;;  %v461_v19 = vrot.slane %v460_v15, 1 }
  0xc2   : > { %1009 = vrot.lane.b32.xlu1 %v1007_v6, %s1682_s29  ;;  %714 = vrot.lane.b32.xlu0 %v712_v7, %s1687_s12  ;;  %v919_v7 = vstv %s1954_s27  ;;  %s1691_s27 = smov 47  }
  0xc3   : > { %v452_v25 = vsel %vm283_vm9, %v450_v14, %v451_v18  ;;  %v462_v37 = vsel %vm294_vm10, %v460_v15, %v461_v19  ;;  %v875_v14 = vmul.f32 %v874_v63, %v1864_v28  ;;  %v1319_v15 = vmul.f32 %v1318_v0, %v1799_v21 }
  0xc4   : > { %v454_v31 = vadd.f32 %v452_v25, %v444_v13  ;;  %v611_v32 = vpop.permute.xlu1 %610  ;;  %v470_v33 = vpop.permute.xlu0 %469  ;;  %v320_v13 = vadd.f32 %v318_v8, %v308_v58  ;;  %v1177_v18 = vstv %s1965_s28  ;;  %v338_v25 = vrot.slane %v1917_v1, 7  ;;  %s1693_s28 = smov 45  }
  0xc5   : > { %v612_v38 = vrot.slane %v611_v32, 1  ;;  %v471_v39 = vrot.slane %v470_v33, 1 }
  0xc6   : > { %v464_v41 = vadd.f32 %v462_v37, %v454_v31  ;;  %1311 = vrot.lane.b32.xlu1 %v1309_v22, %s1683_s30  ;;  %1160 = vrot.lane.b32.xlu0 %v1158_v23, %s1685_s6  ;;  %s1977_s30 = sld [smem:[#allocation3 + $0x31]]  ;;  %v920_v22 = vmul.f32 %v919_v7, %v1759_v47  ;;  %v884_v37 = vstv %s1983_s4  ;;  %s157_s4 = scalar_lea.vmem %s2309_s2, %s1607_s17 }
  0xc7   : > { %v613_v43 = vsel %vm283_vm9, %v611_v32, %v612_v38  ;;  %v472_v44 = vsel %vm305_vm11, %v470_v33, %v471_v39  ;;  %v1178_v32 = vmul.f32 %v1177_v18, %v1864_v28  ;;  %v1027_v33 = vmul.f32 %v1026_v59, %v1864_v28 }
  0xc8   : > { %v615_v48 = vadd.f32 %v613_v43, %v605_v26  ;;  %v474_v49 = vadd.f32 %v472_v44, %v464_v41  ;;  %v621_v50 = vpop.permute.xlu1 %620  ;;  %v772_v52 = vpop.permute.xlu0 %771  ;;  %v329_v26 = vsel %vm328_vm13, %v327_v9, %v1919_v2  ;;  %v1328_v38 = vstv %s1985_s7 }
  0xc9   : > { %v622_v56 = vrot.slane %v621_v50, 1  ;;  %v773_v57 = vrot.slane %v772_v52, 1  ;;  %v331_v31 = vadd.f32 %v329_v26, %v320_v13 }
  0xca   : > { %724 = vrot.lane.b32.xlu1 %v722_v35, %s1686_s11  ;;  %867 = vrot.lane.b32.xlu0 %v865_v42, %s1684_s5  ;;  %v340_v42 = vsel %vm339_vm14, %v338_v25, %v1917_v1  ;;  %v1187_v1 = vstv %s1999_s8 }
  0xcb   : > { %v623_v62 = vsel %vm294_vm10, %v621_v50, %v622_v56  ;;  %v774_v53 = vsel %vm283_vm9, %v772_v52, %v773_v57  ;;  %v342_v46 = vadd.f32 %v340_v42, %v331_v31  ;;  %v1036_v52 = vstv %s2001_s13 }
  0xcc   : > { %v625_v3 = vadd.f32 %v623_v62, %v615_v48  ;;  %v776_v4 = vadd.f32 %v774_v53, %v766_v51  ;;  %v480_v5 = vpop.permute.xlu1 %479  ;;  %v631_v6 = vpop.permute.xlu0 %630  ;;  %v346_v34 = vstv %s1977_s30  ;;  %v885_v48 = vmul.f32 %v884_v37, %v1864_v28 }
  0xcd   : > { %v481_v10 = vrot.slane %v480_v5, 7  ;;  %v632_v11 = vrot.slane %v631_v6, 1  ;;  %v347_v45 = vmul.f32 %v346_v34, %v1799_v21  ;;  %v1188_v62 = vmul.f32 %v1187_v1, %v1864_v28 }
  0xce   : > { %1170 = vrot.lane.b32.xlu1 %v1168_v60, %s1682_s29  ;;  %1019 = vrot.lane.b32.xlu0 %v1017_v61, %s1684_s5  ;;  %v1037_v53 = vmul.f32 %v1036_v52, %v1864_v28 }
  0xcf   : > { %v482_v16 = vsel %vm317_vm12, %v481_v10, %v480_v5  ;;  %v633_v17 = vsel %vm305_vm11, %v631_v6, %v632_v11  ;;  %v348_v61 = vadd.f32 %v347_v45, %v342_v46 }
  0xd0   : > { %v484_v19 = vadd.f32 %v482_v16, %v474_v49  ;;  %v635_v20 = vadd.f32 %v633_v17, %v625_v3  ;;  %v926_v23 = vpop.permute.xlu1 %925  ;;  %v782_v24 = vpop.permute.xlu0 %781  ;;  %v1329_v49 = vmul.f32 %v1328_v38, %v1864_v28  ;;  %v1197_v3 = vstv %s2016_s14 }
  0xd1   : > { %v927_v29 = vrot.slane %v926_v23, 1  ;;  %v783_v30 = vrot.slane %v782_v24, 1  ;;  %v1198_v13 = vmul.f32 %v1197_v3, %v1864_v28  ;;  %v1348_v16 = vstv %s2035_s16 }
  0xd2   : > { %877 = vrot.lane.b32.xlu1 %v875_v14, %s1687_s12  ;;  %1321 = vrot.lane.b32.xlu0 %v1319_v15, %s1685_s6  ;;  %s2025_s6 = sld [smem:[#allocation3 + $0x5]]  ;;  %v1358_v17 = vstv %s2037_s18  ;;  %v1349_v26 = vmul.f32 %v1348_v16, %v1864_v28 }
  0xd3   : > { %v928_v35 = vsel %vm283_vm9, %v926_v23, %v927_v29  ;;  %v784_v36 = vsel %vm294_vm10, %v782_v24, %v783_v30  ;;  %v1359_v29 = vmul.f32 %v1358_v17, %v1864_v28 }
  0xd4   : > { %v930_v2 = vadd.f32 %v928_v35, %v920_v22  ;;  %v2020_v39 = vadd.f32 %v784_v36, %v776_v4  ;;  %v490_v40 = vpop.permute.xlu1 %489  ;;  %v641_v41 = vpop.permute.xlu0 %640  ;;  %v1338_v4 = vstv %s2018_s15 }
  0xd5   : > { %v491_v43 = vrot.slane %v490_v40, 7  ;;  %v642_v44 = vrot.slane %v641_v41, 7  ;;  %v1339_v14 = vmul.f32 %v1338_v4, %v1864_v28 }
  0xd6   : > { %1180 = vrot.lane.b32.xlu1 %v1178_v32, %s1684_s5  ;;  %1029 = vrot.lane.b32.xlu0 %v1027_v33, %s1687_s12 }
  0xd7   : > { %v492_v50 = vsel %vm328_vm13, %v491_v43, %v490_v40  ;;  %v643_v51 = vsel %vm317_vm12, %v642_v44, %v641_v41 }
  0xd8   : > { %v494_v54 = vadd.f32 %v492_v50, %v484_v19  ;;  %v645_v55 = vadd.f32 %v643_v51, %v635_v20  ;;  %v936_v56 = vpop.permute.xlu1 %935  ;;  %v354_v57 = vpop.permute.xlu0 %353  ;;  %v1080_v11 = vstv %s2025_s6 }
  0xd9   : > { %v937_v58 = vrot.slane %v936_v56, 1  ;;  %v355_v60 = vrot.slane %v354_v57, 1  ;;  %v1081_v19 = vmul.f32 %v1080_v11, %v1759_v47 }
  0xda   : > { %887 = vrot.lane.b32.xlu1 %v885_v48, %s1686_s11  ;;  %1331 = vrot.lane.b32.xlu0 %v1329_v49, %s1682_s29  ;;  %s1589_s29 = sld [smem:[#allocation3 + $0x6]] }
  0xdb   : > { %v938_v63 = vsel %vm294_vm10, %v936_v56, %v937_v58  ;;  %v356_v0 = vsel %vm283_vm9, %v354_v57, %v355_v60 }
  0xdc   : > { %v940_v5 = vadd.f32 %v938_v63, %v930_v2  ;;  %v358_v6 = vadd.f32 %v356_v0, %v348_v61  ;;  %v364_v7 = vpop.permute.xlu1 %363  ;;  %v374_v8 = vpop.permute.xlu0 %373 }
  0xdd   : > { %v365_v9 = vrot.slane %v364_v7, 1  ;;  %v375_v10 = vrot.slane %v374_v8, 1 }
  0xde   : > { %1190 = vrot.lane.b32.xlu1 %v1188_v62, %s1687_s12  ;;  %1039 = vrot.lane.b32.xlu0 %v1037_v53, %s1686_s11 }
  0xdf   : > { %v366_v15 = vsel %vm294_vm10, %v364_v7, %v365_v9  ;;  %v376_v22 = vsel %vm305_vm11, %v374_v8, %v375_v10 }
  0xe0   : > { %v368_v18 = vadd.f32 %v366_v15, %v358_v6  ;;  %v793_v59 = vpop.permute.xlu1 %792  ;;  %v1087_v20 = vpop.permute.xlu0 %1086  ;;  %v1241_v44 = vstv %s1589_s29 }
  0xe1   : > { %v794_v23 = vrot.slane %v793_v59, 7  ;;  %v1088_v24 = vrot.slane %v1087_v20, 1  ;;  %v1242_v51 = vmul.f32 %v1241_v44, %v1759_v47 }
  0xe2   : > { %v2057_v25 = vadd.f32 %v376_v22, %v368_v18  ;;  %1200 = vrot.lane.b32.xlu1 %v1198_v13, %s1686_s11  ;;  %1341 = vrot.lane.b32.xlu0 %v1339_v14, %s1684_s5  ;;  %s1526_s5 = sld [smem:[#allocation3 + $0x32]] }
  0xe3   : > { %v795_v30 = vsel %vm305_vm11, %v794_v23, %v793_v59  ;;  %v1089_v31 = vsel %vm283_vm9, %v1087_v20, %v1088_v24 }
  0xe4   : > { %v797_v32 = vadd.f32 %v795_v30, %v2020_v39  ;;  %v1091_v33 = vadd.f32 %v1089_v31, %v1081_v19  ;;  %v651_v34 = vpop.permute.xlu1 %650  ;;  %v500_v35 = vpop.permute.xlu0 %499 }
  0xe5   : > { %v652_v36 = vrot.slane %v651_v34, 7  ;;  %v501_v37 = vrot.slane %v500_v35, 7 }
  0xe6   : > { %1351 = vrot.lane.b32.xlu0 %v1349_v26, %s1687_s12  ;;  %1361 = vrot.lane.b32.xlu1 %v1359_v29, %s1686_s11  ;;  %s1540_s11 = sld [smem:[#allocation3 + $0x33]] }
  0xe7   : > { %v653_v38 = vsel %vm328_vm13, %v652_v36, %v651_v34  ;;  %v502_v2 = vsel %vm339_vm14, %v501_v37, %v500_v35 }
  0xe8   : > { %v655_v28 = vadd.f32 %v653_v38, %v645_v55  ;;  %v2070_v40 = vadd.f32 %v502_v2, %v494_v54  ;;  %v1097_v41 = vpop.permute.xlu1 %1096  ;;  %v946_v42 = vpop.permute.xlu0 %945 }
  0xe9   : > { %v1098_v43 = vrot.slane %v1097_v41, 1  ;;  %v947_v39 = vrot.slane %v946_v42, 7 }
  0xeb   : > { %v1099_v45 = vsel %vm294_vm10, %v1097_v41, %v1098_v43  ;;  %v948_v46 = vsel %vm305_vm11, %v947_v39, %v946_v42 }
  0xec   : > { %v1101_v48 = vadd.f32 %v1099_v45, %v1091_v33  ;;  %v950_v49 = vadd.f32 %v948_v46, %v940_v5  ;;  %v803_v50 = vpop.permute.xlu1 %802  ;;  %v1248_v1 = vpop.permute.xlu0 %1247 }
  0xed   : > { %v804_v52 = vrot.slane %v803_v50, 7  ;;  %v1249_v56 = vrot.slane %v1248_v1, 1 }
  0xef   : > { %v805_v54 = vsel %vm317_vm12, %v804_v52, %v803_v50  ;;  %v1250_v55 = vsel %vm283_vm9, %v1248_v1, %v1249_v56 }
  0xf0   : > { %v807_v57 = vadd.f32 %v805_v54, %v797_v32  ;;  %v1252_v58 = vadd.f32 %v1250_v55, %v1242_v51  ;;  %v956_v60 = vpop.permute.xlu1 %955  ;;  %v661_v61 = vpop.permute.xlu0 %660 }
  0xf1   : > { %v957_v62 = vrot.slane %v956_v60, 7  ;;  %v662_v53 = vrot.slane %v661_v61, 7 }
  0xf3   : > { %v958_v63 = vsel %vm317_vm12, %v957_v62, %v956_v60  ;;  %v663_v0 = vsel %vm339_vm14, %v662_v53, %v661_v61  ;;  %v506_v60 = vstv %s1526_s5 }
  0xf4   : > { %v960_v3 = vadd.f32 %v958_v63, %v950_v49  ;;  %v2079_v4 = vadd.f32 %v663_v0, %v655_v28  ;;  %v1258_v47 = vpop.permute.xlu1 %1257  ;;  %v1107_v5 = vpop.permute.xlu0 %1106  ;;  %v507_v63 = vmul.f32 %v506_v60, %v1799_v21 }
  0xf5   : > { %v1259_v6 = vrot.slane %v1258_v47, 1  ;;  %v1108_v7 = vrot.slane %v1107_v5, 7 }
  0xf7   : > { %v1260_v8 = vsel %vm294_vm10, %v1258_v47, %v1259_v6  ;;  %v1109_v9 = vsel %vm305_vm11, %v1108_v7, %v1107_v5 }
  0xf8   : > { %v1262_v10 = vadd.f32 %v1260_v8, %v1252_v58  ;;  %v1111_v11 = vadd.f32 %v1109_v9, %v1101_v48  ;;  %v514_v13 = vpop.permute.xlu1 %513  ;;  %v813_v14 = vpop.permute.xlu0 %812  ;;  %v508_v8 = vadd.f32 %v507_v63, %v2070_v40 }
  0xf9   : > { %v814_v15 = vrot.slane %v813_v14, 7  ;;  %v515_v53 = vrot.slane %v514_v13, 1 }
  0xfb   : > { %v815_v16 = vsel %vm328_vm13, %v814_v15, %v813_v14  ;;  %v516_v5 = vsel %vm283_vm9, %v514_v13, %v515_v53  ;;  %v2149_v53 = vsub.s32 2, %v1751_v27 }
  0xfc   : > { %v817_v17 = vadd.f32 %v815_v16, %v807_v57  ;;  %v1117_v18 = vpop.permute.xlu1 %1116  ;;  %v966_v59 = vpop.permute.xlu0 %965  ;;  %v518_v14 = vadd.f32 %v516_v5, %v508_v8 }
  0xfd   : > { %v1118_v19 = vrot.slane %v1117_v18, 7  ;;  %v967_v20 = vrot.slane %v966_v59, 7 }
  0xff   : > { %v1119_v22 = vsel %vm317_vm12, %v1118_v19, %v1117_v18  ;;  %v968_v23 = vsel %vm328_vm13, %v967_v20, %v966_v59 }
 0x100   : > { %v1121_v24 = vadd.f32 %v1119_v22, %v1111_v11  ;;  %v2086_v26 = vadd.f32 %v968_v23, %v960_v3  ;;  %v823_v29 = vpop.permute.xlu1 %822  ;;  %v1268_v30 = vpop.permute.xlu0 %1267 }
 0x101   : > { %v824_v31 = vrot.slane %v823_v29, 7  ;;  %v1269_v32 = vrot.slane %v1268_v30, 7 }
 0x103   : > { %v825_v33 = vsel %vm339_vm14, %v824_v31, %v823_v29  ;;  %v1270_v34 = vsel %vm305_vm11, %v1269_v32, %v1268_v30 }
 0x104   : > { %v2090_v35 = vadd.f32 %v825_v33, %v817_v17  ;;  %v1272_v36 = vadd.f32 %v1270_v34, %v1262_v10  ;;  %v2092_v37 = vpop.permute.xlu1 %674  ;;  %v524_v38 = vpop.permute.xlu0 %523  ;;  %v667_v17 = vstv %s1540_s11 }
 0x105   : > { %v525_v0 = vrot.slane %v524_v38, 1  ;;  %v676_v20 = vrot.slane %v2092_v37, 1  ;;  %v668_v23 = vmul.f32 %v667_v17, %v1799_v21 }
 0x107   : > { %v526_v9 = vsel %vm294_vm10, %v524_v38, %v525_v0  ;;  %v677_v21 = vsel %vm283_vm9, %v2092_v37, %v676_v20 }
 0x108   : > { %v1127_v2 = vpop.permute.xlu1 %1126  ;;  %v2094_v28 = vpop.permute.xlu0 %975  ;;  %v528_v13 = vadd.f32 %v526_v9, %v518_v14 }
 0x109   : > { %v1128_v41 = vrot.slane %v1127_v2, 7 }
 0x10b   : > { %v1129_v42 = vsel %vm328_vm13, %v1128_v41, %v1127_v2  ;;  %v2133_v41 = vsub.s32 1, %v1751_v27 }
 0x10c   : > { %v2097_v43 = vadd.f32 %v1129_v42, %v1121_v24  ;;  %v534_v39 = vpop.permute.xlu1 %533  ;;  %v1278_v44 = vpop.permute.xlu0 %1277  ;;  %v2136_v42 = vsub.s32 0, %v1751_v27 }
 0x10d   : > { %v1279_v45 = vrot.slane %v1278_v44, 7  ;;  %v535_v6 = vrot.slane %v534_v39, 1 }
 0x10f   : > { %v1280_v46 = vsel %vm317_vm12, %v1279_v45, %v1278_v44  ;;  %v536_v18 = vsel %vm305_vm11, %v534_v39, %v535_v6  ;;  %v669_v45 = vadd.f32 %v668_v23, %v2079_v4 }
 0x110   : > { %v2100_v48 = vadd.f32 %v1280_v46, %v1272_v36  ;;  %v2102_v49 = vpop.permute.xlu1 %1136  ;;  %v685_v50 = vpop.permute.xlu0 %684  ;;  %v538_v24 = vadd.f32 %v536_v18, %v528_v13  ;;  %v982_v13 = vstv %s2151_s21 }
 0x111   : > { %v686_v32 = vrot.slane %v685_v50, 1  ;;  %v679_v37 = vadd.f32 %v677_v21, %v669_v45 }
 0x114   : > { %v2104_v51 = vpop.permute.xlu1 %836  ;;  %v2106_v1 = vpop.permute.xlu0 %1287 }
 0x115   : > { %v838_v23 = vrot.slane %v2104_v51, 1 }
 0x118   : > { %v544_v52 = vpop.permute.xlu1 %543  ;;  %v385_v56 = vpop.permute.xlu0 %384 }
 0x119   : > { %v386_v7 = vrot.slane %v385_v56, 7  ;;  %v545_v10 = vrot.slane %v544_v52, 7 }
 0x11b   : > { %v387_v59 = vsel %vm317_vm12, %v386_v7, %v385_v56  ;;  %v546_v40 = vsel %vm317_vm12, %v545_v10, %v544_v52 }
 0x11c   : > { %v2108_v54 = vpop.permute.xlu1 %989  ;;  %v695_v55 = vpop.permute.xlu0 %694  ;;  %v389_v29 = vadd.f32 %v387_v59, %v2057_v25  ;;  %v548_v38 = vadd.f32 %v546_v40, %v538_v24  ;;  %v977_v59 = vrot.slane %v2094_v28, 7  ;;  %v1143_v24 = vstv %s2156_s22 }
 0x11d   : > { %v696_v39 = vrot.slane %v695_v55, 1 }
 0x11f   : > { %v697_v5 = vsel %vm305_vm11, %v695_v55, %v696_v39 }
 0x120   : > { %v2110_v57 = vpop.permute.xlu1 %846  ;;  %v2112_v58 = vpop.permute.xlu0 %1297 }
 0x121   : > { %v848_v39 = vrot.slane %v2110_v57, 1 }
 0x124   : > { %v554_v61 = vpop.permute.xlu1 %553  ;;  %v395_v62 = vpop.permute.xlu0 %394 }
 0x125   : > { %v396_v11 = vrot.slane %v395_v62, 7  ;;  %v555_v19 = vrot.slane %v554_v61, 7 }
 0x127   : > { %v397_v22 = vsel %vm328_vm13, %v396_v11, %v395_v62  ;;  %v556_v33 = vsel %vm328_vm13, %v555_v19, %v554_v61  ;;  %v687_v61 = vsel %vm294_vm10, %v685_v50, %v686_v32 }
 0x128   : > { %v2115_v3 = vpop.permute.xlu1 %999  ;;  %v705_v47 = vpop.permute.xlu0 %704  ;;  %v399_v2 = vadd.f32 %v397_v22, %v389_v29  ;;  %v558_v46 = vadd.f32 %v556_v33, %v548_v38  ;;  %v689_v50 = vadd.f32 %v687_v61, %v679_v37  ;;  %v978_v38 = vsel %vm339_vm14, %v977_v59, %v2094_v28 }
 0x129   : > { %v706_v62 = vrot.slane %v705_v47, 7  ;;  %v1304_v28 = vstv %s2166_s24 }
 0x12a   : > { %v699_v9 = vadd.f32 %v697_v5, %v689_v50  ;;  %v849_v5 = vsel %vm294_vm10, %v2110_v57, %v848_v39 }
 0x12b   : > { %v707_v27 = vsel %vm317_vm12, %v706_v62, %v705_v47  ;;  %v829_v47 = vstv %s2146_s19  ;;  %v980_v62 = vadd.f32 %v978_v38, %v2086_v26 }
 0x12c   : > { %v2120_v15 = vpop.permute.xlu1 %857  ;;  %v2122_v16 = vpop.permute.xlu0 %1150  ;;  %v709_v14 = vadd.f32 %v707_v27, %v699_v9 }
 0x12d   : > { %v859_v61 = vrot.slane %v2120_v15, 7 }
 0x130   : > { %v564_v30 = vpop.permute.xlu1 %563  ;;  %v405_v31 = vpop.permute.xlu0 %404 }
 0x131   : > { %v565_v34 = vrot.slane %v564_v30, 7  ;;  %v406_v36 = vrot.slane %v405_v31, 7 }
 0x133   : > { %v566_v25 = vsel %vm339_vm14, %v565_v34, %v564_v30  ;;  %v407_v44 = vsel %vm339_vm14, %v406_v36, %v405_v31  ;;  %v1138_v30 = vrot.slane %v2102_v49, 7  ;;  %v1651_v31 = vld [vmem:[#allocation2 + $0x1] ss:$2 sm:$0x7] }
 0x134   : > { %v409_v52 = vadd.f32 %v407_v44, %v399_v2  ;;  %v2143_v56 = vpop.permute.xlu1 %1009  ;;  %v715_v60 = vpop.permute.xlu0 %714  ;;  %v568_v63 = vadd.f32 %v566_v25, %v558_v46  ;;  %v830_v32 = vmul.f32 %v1651_v31, %v829_v47  ;;  %v1289_v2 = vrot.slane %v2106_v1, 7 }
 0x135   : > { %v716_v6 = vrot.slane %v715_v60, 7  ;;  %v983_v21 = vmul.f32 %v1651_v31, %v982_v13  ;;  %v991_v25 = vrot.slane %v2108_v54, 1  ;;  %v1144_v44 = vmul.f32 %v1651_v31, %v1143_v24 }
 0x136   : > { %v424_v0 = vrot.slane %v409_v52, %v2133_v41  ;;  %v420_v4 = vrot.slane %v409_v52, %v2136_v42  ;;  %v579_v10 = vrot.slane %v568_v63, %v2136_v42  ;;  %v428_v55 = vrot.slane %v409_v52, %v2149_v53 }
 0x137   : > { %v717_v11 = vsel %vm328_vm13, %v716_v6, %v715_v60  ;;  %v587_v40 = vrot.slane %v568_v63, %v2149_v53  ;;  %v583_v22 = vrot.slane %v568_v63, %v2133_v41  ;;  %v839_v52 = vsel %vm283_vm9, %v2104_v51, %v838_v23 }
 0x138   : > { %v2158_v7 = vpop.permute.xlu1 %1311  ;;  %v2160_v8 = vpop.permute.xlu0 %1160  ;;  %431 = vrot.lane.b32.xlu1 %v424_v0, %s1688_s23  ;;  %429 = vrot.lane.b32.xlu0 %v420_v4, %s1688_s23  ;;  %v719_v20 = vadd.f32 %v717_v11, %v709_v14  ;;  %v1299_v60 = vrot.slane %v2112_v58, 7  ;;  %v1139_v37 = vsel %vm339_vm14, %v1138_v30, %v2102_v49  ;;  %v831_v63 = vadd.f32 %v830_v32, %v2090_v35 }
 0x139   : > { %v1290_v51 = vsel %vm328_vm13, %v1289_v2, %v2106_v1  ;;  %v1001_v6 = vrot.slane %v2115_v3, 1  ;;  %v992_v35 = vsel %vm283_vm9, %v2108_v54, %v991_v25  ;;  %v1305_v49 = vmul.f32 %v1651_v31, %v1304_v28 }
 0x13a   : > { %v841_v50 = vadd.f32 %v839_v52, %v831_v63  ;;  %v1300_v9 = vsel %vm339_vm14, %v1299_v60, %v2112_v58  ;;  %v860_v1 = vsel %vm305_vm11, %v859_v61, %v2120_v15  ;;  %v1292_v11 = vadd.f32 %v1290_v51, %v2100_v48 }
 0x13b   : > { %v984_v14 = vadd.f32 %v983_v21, %v980_v62  ;;  %v1002_v47 = vsel %vm294_vm10, %v2115_v3, %v1001_v6  ;;  %v1152_v58 = vrot.slane %v2122_v16, 1  ;;  %v1313_v3 = vrot.slane %v2158_v7, 1 }
 0x13c   : > { %v725_v17 = vpop.permute.xlu1 %724  ;;  %v2168_v18 = vpop.permute.xlu0 %867  ;;  %588 = vrot.lane.b32.xlu1 %v579_v10, %s1689_s25  ;;  %433 = vrot.lane.b32.xlu0 %v428_v55, %s1688_s23  ;;  %v1011_v10 = vrot.slane %v2143_v56, 7  ;;  %v1141_v55 = vadd.f32 %v1139_v37, %v2097_v43  ;;  %v1162_v43 = vrot.slane %v2160_v8, 1 }
 0x13d   : > { %v726_v19 = vrot.slane %v725_v17, 7  ;;  %v869_v26 = vrot.slane %v2168_v18, 7  ;;  %v994_v13 = vadd.f32 %v992_v35, %v984_v14 }
 0x13e   : > { %v1012_v48 = vsel %vm305_vm11, %v1011_v10, %v2143_v56  ;;  %v1163_v39 = vsel %vm294_vm10, %v2160_v8, %v1162_v43 }
 0x13f   : > { %v727_v29 = vsel %vm339_vm14, %v726_v19, %v725_v17  ;;  %v851_v17 = vadd.f32 %v849_v5, %v841_v50  ;;  %v870_v15 = vsel %vm317_vm12, %v869_v26, %v2168_v18  ;;  %v1004_v24 = vadd.f32 %v1002_v47, %v994_v13 }
 0x140   : > { %v729_v33 = vadd.f32 %v727_v29, %v719_v20  ;;  %v2179_v34 = vpop.permute.xlu1 %1170  ;;  %v1020_v36 = vpop.permute.xlu0 %1019  ;;  %592 = vrot.lane.b32.xlu1 %v587_v40, %s1689_s25  ;;  %590 = vrot.lane.b32.xlu0 %v583_v22, %s1689_s25  ;;  %v1302_v20 = vadd.f32 %v1300_v9, %v1292_v11  ;;  %v1145_v29 = vadd.f32 %v1144_v44, %v1141_v55 }
 0x141   : > { %v1021_v19 = vrot.slane %v1020_v36, 7  ;;  %v862_v40 = vadd.f32 %v860_v1, %v851_v17  ;;  %v1153_v18 = vsel %vm283_vm9, %v2122_v16, %v1152_v58  ;;  %v1014_v21 = vadd.f32 %v1012_v48, %v1004_v24 }
 0x142   : > { %v744_v45 = vrot.slane %v729_v33, %v2133_v41  ;;  %v740_v46 = vrot.slane %v729_v33, %v2136_v42  ;;  %v748_v27 = vrot.slane %v729_v33, %v2149_v53  ;;  %v1172_v33 = vrot.slane %v2179_v34, 7 }
 0x143   : > { %v872_v30 = vadd.f32 %v870_v15, %v862_v40  ;;  %v1022_v38 = vsel %vm317_vm12, %v1021_v19, %v1020_v36  ;;  %v1306_v56 = vadd.f32 %v1305_v49, %v1302_v20  ;;  %v1155_v60 = vadd.f32 %v1153_v18, %v1145_v29 }
 0x144   : > { %v878_v0 = vpop.permute.xlu1 %877  ;;  %v2197_v4 = vpop.permute.xlu0 %1321  ;;  %751 = vrot.lane.b32.xlu1 %v744_v45, %s1690_s26  ;;  %749 = vrot.lane.b32.xlu0 %v740_v46, %s1690_s26  ;;  %v1314_v16 = vsel %vm283_vm9, %v2158_v7, %v1313_v3  ;;  %v1024_v61 = vadd.f32 %v1022_v38, %v1014_v21  ;;  %v1173_v37 = vsel %vm305_vm11, %v1172_v33, %v2179_v34 }
 0x145   : > { %v879_v57 = vrot.slane %v878_v0, 7  ;;  %v1323_v44 = vrot.slane %v2197_v4, 1  ;;  %v1165_v51 = vadd.f32 %v1163_v39, %v1155_v60  ;;  %v1316_v49 = vadd.f32 %v1314_v16, %v1306_v56 }
 0x146   : > { %v246_v16 = vand.u32 127, %v207_v12 }
 0x147   : > { %v880_v22 = vsel %vm328_vm13, %v879_v57, %v878_v0  ;;  %v1324_v50 = vsel %vm294_vm10, %v2197_v4, %v1323_v44 }
 0x148   : > { %v1181_v59 = vpop.permute.xlu1 %1180  ;;  %v1030_v54 = vpop.permute.xlu0 %1029  ;;  %753 = vrot.lane.b32.xlu0 %v748_v27, %s1690_s26  ;;  %v882_v25 = vadd.f32 %v880_v22, %v872_v30  ;;  %v1175_v27 = vadd.f32 %v1173_v37, %v1165_v51  ;;  %v1326_v4 = vadd.f32 %v1324_v50, %v1316_v49 }
 0x149   : > { %v1031_v23 = vrot.slane %v1030_v54, 7  ;;  %v1182_v45 = vrot.slane %v1181_v59, 7 }
 0x14b   : > { %v1032_v46 = vsel %vm328_vm13, %v1031_v23, %v1030_v54  ;;  %v1183_v7 = vsel %vm317_vm12, %v1182_v45, %v1181_v59 }
 0x14c   : > { %v888_v31 = vpop.permute.xlu1 %887  ;;  %v1332_v32 = vpop.permute.xlu0 %1331  ;;  %v1034_v5 = vadd.f32 %v1032_v46, %v1024_v61  ;;  %v1185_v14 = vadd.f32 %v1183_v7, %v1175_v27  ;;  %v247_v61 = vadd.s32 128, %v246_v16 }
 0x14d   : > { %v889_v2 = vrot.slane %v888_v31, 7  ;;  %v1333_v8 = vrot.slane %v1332_v32, 7 }
 0x14f   : > { %v890_v52 = vsel %vm339_vm14, %v889_v2, %v888_v31  ;;  %v1334_v10 = vsel %vm305_vm11, %v1333_v8, %v1332_v32  ;;  %vm1231_vm11 = vcmask 375808  }
 0x150   : > { %v892_v36 = vadd.f32 %v890_v52, %v882_v25  ;;  %v1191_v28 = vpop.permute.xlu1 %1190  ;;  %v1040_v62 = vpop.permute.xlu0 %1039  ;;  %v1336_v58 = vadd.f32 %v1334_v10, %v1326_v4 }
 0x151   : > { %v1192_v63 = vrot.slane %v1191_v28, 7  ;;  %v1041_v0 = vrot.slane %v1040_v62, 7 }
 0x152   : > { %v897_v6 = vrot.slane %v892_v36, %v2136_v42  ;;  %v901_v26 = vrot.slane %v892_v36, %v2133_v41  ;;  %v905_v17 = vrot.slane %v892_v36, %v2149_v53 }
 0x153   : > { %v1042_v35 = vsel %vm339_vm14, %v1041_v0, %v1040_v62  ;;  %v1193_v57 = vsel %vm328_vm13, %v1192_v63, %v1191_v28  ;;  %v2264_v62 = vand.u32 15, %v246_v16 }
 0x154   : > { %v1044_v9 = vadd.f32 %v1042_v35, %v1034_v5  ;;  %v1201_v34 = vpop.permute.xlu1 %1200  ;;  %v1342_v1 = vpop.permute.xlu0 %1341  ;;  %906 = vrot.lane.b32.xlu1 %v897_v6, %s1687_s12  ;;  %908 = vrot.lane.b32.xlu0 %v901_v26, %s1687_s12  ;;  %v1195_v15 = vadd.f32 %v1193_v57, %v1185_v14 }
 0x155   : > { %v1202_v55 = vrot.slane %v1201_v34, 7  ;;  %v1343_v11 = vrot.slane %v1342_v1, 7  ;;  %vm569_vm2 = vcmp.ge.s32.totalorder %v2264_v62, 2  ;;  %vm410_vm4 = vcmp.ge.s32.totalorder %v2264_v62, 3 }
 0x156   : > { %v1055_v59 = vrot.slane %v1044_v9, %v2136_v42  ;;  %v1063_v43 = vrot.slane %v1044_v9, %v2149_v53  ;;  %v1059_v23 = vrot.slane %v1044_v9, %v2133_v41  ;;  %vm730_vm6 = vcmp.ge.s32.totalorder %v2264_v62, 1 }
 0x157   : > { %v1203_v54 = vsel %vm339_vm14, %v1202_v55, %v1201_v34  ;;  %v1344_v47 = vsel %vm317_vm12, %v1343_v11, %v1342_v1  ;;  %vm1047_vm9 = vcmp.lt.s32.totalorder %v2264_v62, 15  ;;  %vm1208_vm12 = vcmp.lt.s32.totalorder %v2264_v62, 14 }
 0x158   : > { %v1352_v19 = vpop.permute.xlu0 %1351  ;;  %910 = vrot.lane.b32.xlu1 %v905_v17, %s1687_s12  ;;  %1064 = vrot.lane.b32.xlu0 %v1055_v59, %s1691_s27  ;;  %v1362_v13 = vpop.permute.xlu1 %1361  ;;  %v1205_v48 = vadd.f32 %v1203_v54, %v1195_v15  ;;  %v1346_v22 = vadd.f32 %v1344_v47, %v1336_v58  ;;  %s1692_s12 = smov 46  }
 0x159   : > { %v1353_v20 = vrot.slane %v1352_v19, 7  ;;  %v1363_v40 = vrot.slane %v1362_v13, 7 }
 0x15a   : > { %v1216_v30 = vrot.slane %v1205_v48, %v2136_v42  ;;  %v1220_v31 = vrot.slane %v1205_v48, %v2133_v41  ;;  %v1224_v18 = vrot.slane %v1205_v48, %v2149_v53 }
 0x15b   : > { %v1354_v24 = vsel %vm328_vm13, %v1353_v20, %v1352_v19  ;;  %v1364_v29 = vsel %vm339_vm14, %v1363_v40, %v1362_v13 }
 0x15c   : > { %v1356_v3 = vadd.f32 %v1354_v24, %v1346_v22  ;;  %1066 = vrot.lane.b32.xlu1 %v1059_v23, %s1691_s27  ;;  %1068 = vrot.lane.b32.xlu0 %v1063_v43, %s1691_s27 }
 0x15e   : > { %v1366_v32 = vadd.f32 %v1364_v29, %v1356_v3 }
 0x160   : > { %1225 = vrot.lane.b32.xlu1 %v1216_v30, %s1692_s12  ;;  %1227 = vrot.lane.b32.xlu0 %v1220_v31, %s1692_s12  ;;  %v1377_v33 = vrot.slane %v1366_v32, %v2136_v42  ;;  %v1381_v38 = vrot.slane %v1366_v32, %v2133_v41  ;;  %v1385_v2 = vrot.slane %v1366_v32, %v2149_v53  ;;  %v2266_v41 = vand.u32 15, %v247_v61  ;;  %v1413_v61 = vld [vmem:[%s1747_s20] sm:$0xff] }
 0x162   : > { %vm570_vm3 = vcmp.ge.s32.totalorder %v2266_v41, 2  ;;  %vm411_vm5 = vcmp.ge.s32.totalorder %v2266_v41, 3  ;;  %vm731_vm7 = vcmp.ge.s32.totalorder %v2266_v41, 1  ;;  %vm1048_vm10 = vcmp.lt.s32.totalorder %v2266_v41, 15 }
 0x163   : > { %vm1209_vm14 = vcmp.lt.s32.totalorder %v2266_v41, 14 }
 0x164   : > { %1229 = vrot.lane.b32.xlu1 %v1224_v18, %s1692_s12  ;;  %1386 = vrot.lane.b32.xlu0 %v1377_v33, %s1693_s28 }
 0x168   : > { %1388 = vrot.lane.b32.xlu1 %v1381_v38, %s1693_s28  ;;  %1390 = vrot.lane.b32.xlu0 %v1385_v2, %s1693_s28 }
 0x1aa   : > { %v430_v21 = vpop.permute.xlu0 %429  ;;  %v432_v56 = vpop.permute.xlu1 %431 }
 0x1ab   : > { %v436_v51 = vsel %vm435_vm0, %v430_v21, %v432_v56 }
 0x1ac   : > { %v440_v35 = vsel %vm410_vm4, %v436_v51, 0.0 }
 0x1ae   : > { %v434_v39 = vpop.permute.xlu0 %433  ;;  %v589_v25 = vpop.permute.xlu1 %588 }
 0x1af   : > { %v437_v5 = vsel %vm435_vm0, %v432_v56, %v434_v39  ;;  %vm1370_vm0 = vcmp.lt.s32.totalorder %v2266_v41, 13 }
 0x1b0   : > { %v441_v49 = vsel %vm411_vm5, %v437_v5, 0.0 }
 0x1b2   : > { %v591_v44 = vpop.permute.xlu0 %590  ;;  %v593_v45 = vpop.permute.xlu1 %592 }
 0x1b3   : > { %v595_v8 = vsel %vm594_vm15, %v589_v25, %v591_v44  ;;  %v596_v63 = vsel %vm594_vm15, %v591_v44, %v593_v45  ;;  %vm1369_vm15 = vcmp.lt.s32.totalorder %v2264_v62, 13 }
 0x1b4   : > { %v599_v50 = vsel %vm569_vm2, %v595_v8, 0.0  ;;  %v600_v7 = vsel %vm570_vm3, %v596_v63, 0.0 }
 0x1b5   : > { %v601_v10 = vadd.f32 %v599_v50, %v440_v35  ;;  %v602_v57 = vadd.f32 %v600_v7, %v441_v49 }
 0x1b6   : > { %v750_v46 = vpop.permute.xlu0 %749  ;;  %v752_v52 = vpop.permute.xlu1 %751 }
 0x1b7   : > { %v756_v6 = vsel %vm755_vm1, %v750_v46, %v752_v52 }
 0x1b8   : > { %v760_v27 = vsel %vm730_vm6, %v756_v6, 0.0 }
 0x1b9   : > { %v762_v17 = vadd.f32 %v760_v27, %v601_v10 }
 0x1ba   : > { %v754_v60 = vpop.permute.xlu0 %753 }
 0x1bb   : > { %v757_v26 = vsel %vm755_vm1, %v752_v52, %v754_v60 }
 0x1bc   : > { %v761_v9 = vsel %vm731_vm7, %v757_v26, 0.0 }
 0x1bd   : > { %v763_v59 = vadd.f32 %v761_v9, %v602_v57 }
 0x1c6   : > { %v907_v36 = vpop.permute.xlu1 %906  ;;  %v909_v28 = vpop.permute.xlu0 %908 }
 0x1c7   : > { %v912_v4 = vsel %vm328_vm13, %v907_v36, %v909_v28 }
 0x1c8   : > { %v916_v13 = vadd.f32 %v912_v4, %v762_v17 }
 0x1ca   : > { %v911_v53 = vpop.permute.xlu1 %910  ;;  %v1065_v37 = vpop.permute.xlu0 %1064 }
 0x1cb   : > { %v913_v14 = vsel %vm328_vm13, %v909_v28, %v911_v53  ;;  %vm1392_vm13 = vcmask 367616  }
 0x1cc   : > { %v917_v20 = vadd.f32 %v913_v14, %v763_v59 }
 0x1ce   : > { %v1067_v12 = vpop.permute.xlu1 %1066  ;;  %v1069_v0 = vpop.permute.xlu0 %1068 }
 0x1cf   : > { %v1071_v55 = vsel %vm1070_vm8, %v1065_v37, %v1067_v12  ;;  %v1072_v11 = vsel %vm1070_vm8, %v1067_v12, %v1069_v0 }
 0x1d0   : > { %v1075_v47 = vsel %vm1047_vm9, %v1071_v55, 0.0  ;;  %v1076_v58 = vsel %vm1048_vm10, %v1072_v11, 0.0 }
 0x1d1   : > { %v1077_v22 = vadd.f32 %v1075_v47, %v916_v13  ;;  %v1078_v23 = vadd.f32 %v1076_v58, %v917_v20 }
 0x1d2   : > { %v1226_v34 = vpop.permute.xlu1 %1225  ;;  %v1228_v1 = vpop.permute.xlu0 %1227 }
 0x1d3   : > { %v1232_v54 = vsel %vm1231_vm11, %v1226_v34, %v1228_v1 }
 0x1d4   : > { %v1236_v43 = vsel %vm1208_vm12, %v1232_v54, 0.0 }
 0x1d5   : > { %v1238_v3 = vadd.f32 %v1236_v43, %v1077_v22 }
 0x1d6   : > { %v1230_v15 = vpop.permute.xlu1 %1229  ;;  %v1387_v19 = vpop.permute.xlu0 %1386 }
 0x1d7   : > { %v1233_v40 = vsel %vm1231_vm11, %v1228_v1, %v1230_v15 }
 0x1d8   : > { %v1237_v48 = vsel %vm1209_vm14, %v1233_v40, 0.0 }
 0x1d9   : > { %v1239_v30 = vadd.f32 %v1237_v48, %v1078_v23 }
 0x1da   : > { %v1389_v24 = vpop.permute.xlu1 %1388  ;;  %v1391_v29 = vpop.permute.xlu0 %1390 }
 0x1db   : > { %v1393_v31 = vsel %vm1392_vm13, %v1387_v19, %v1389_v24  ;;  %v1394_v32 = vsel %vm1392_vm13, %v1389_v24, %v1391_v29 }
 0x1dc   : > { %v1397_v18 = vsel %vm1369_vm15, %v1393_v31, 0.0  ;;  %v1398_v33 = vsel %vm1370_vm0, %v1394_v32, 0.0 }
 0x1dd   : > { %v1399_v38 = vadd.f32 %v1397_v18, %v1238_v3  ;;  %v1400_v2 = vadd.f32 %v1398_v33, %v1239_v30 }
 0x1df   : > { %v1603_v21 = vmul.f32 -1.442695, %v1399_v38  ;;  %v1604_v56 = vmul.f32 -1.442695, %v1400_v2 }
 0x1e1   : > { %1643 = vpow2.f32 %v1603_v21 }
 0x1e2   : > { %1645 = vpow2.f32 %v1604_v56 }
 0x1eb   : > { %v1644_v39 = vpop.eup %1643 }
 0x1ec   : > { %v1646_v25 = vpop.eup %1645  ;;  %v1407_v44 = vadd.f32 1.0, %v1644_v39 }
 0x1ed   : > { %v1408_v45 = vadd.f32 1.0, %v1646_v25 }
 0x1ee   : > { %1647 = vrcp.f32 %v1407_v44 }
 0x1ef   : > { %1649 = vrcp.f32 %v1408_v45 }
 0x1f8   : > { %v1648_v46 = vpop.eup %1647 }
 0x1f9   : > { %v1650_v52 = vpop.eup %1649  ;;  %v1417_v60 = vrot.slane %v1648_v46, %v2136_v42 }
 0x1fa   : > { %v1421_v16 = vrot.slane %v1650_v52, %v2136_v42 }
 0x1fc   : > { %v1424_v36 = vcombine.low %v1417_v60, %v1421_v16 }
 0x1fe   : > { %v1426_v28 = vmul.f32 %v1424_v36, %v1413_v61 }
 0x200   : > { %1427 = vst [vmem:[%s157_s4] sm:$0xff] %v1426_v28 }
 0x201 PF: > { %s13_s9 = sadd.s32 1, %s1677_s9  }
 0x202   : > { %p10_p1 = scmp.ge.s32.totalorder %s13_s9, 4  }
 0x204   :  { %12 = sbr.rel (!%p10_p1) target bundleno = 1 (0x1), region = 66 }
 0x20b   :  { %1449 = vsyncpa [#allocation4], 1 }
 0x20c   :  { %1451 = vsyncpa [#allocation4 + $0x1], 1 }

</bundles_post_ra>
